<compile_context>
chip_gen: v7x
topology: tpu7x:2x2x1
jax: 0.10.0
libtpu: 0.0.40
codegen_flags: <defaults>
</compile_context>

<pallas_src>
import functools
import numpy as np
import jax
import jax.numpy as jnp
from jax import lax
from jax.experimental import pallas as pl
from jax.experimental.pallas import tpu as pltpu


# ----------------------------- static geometry ------------------------------ #
# Encoder geometry for 3x64x64 inputs:
#   conv1: 3->8,  k=2, s=2 : 64x64 -> 32x32   (lanes: wo*8  + co = 256)
#   conv2: 8->16, k=2, s=2 : 32x32 -> 16x16   (lanes: wo*16 + co = 256)
#   conv3: 16->32,k=3, s=2 : 16x16 -> 7x7     (lanes: wo*32 + co = 224 -> pad 256)
#   flatten (NCHW) -> Linear(1568,128) -> ReLU -> Linear(128,4)
LANES3, LANES3P = 7 * 32, 256
NJ = 2 * 3 * 7          # 42 = (conv2 tap, conv3 tap, conv3 out-row) combos per image


def _build_input_row_order():
    """Raw-input rows feeding conv1, ordered (t2-major, t3, ho) so that every
    downstream layer's kh-tap row sets are contiguous 8-aligned blocks once the
    batch is interleaved (row index inside a grid step = j*TB + b)."""
    rows_e, rows_o = [], []
    for t2 in range(2):              # conv2 kh tap
        for t3 in range(3):          # conv3 kh tap
            for ho in range(7):      # conv3 output row
                r1 = 2 * (2 * ho + t3) + t2      # conv1 output row needed
                rows_e.append(2 * r1)            # conv1 kh tap 0 -> even input row
                rows_o.append(2 * r1 + 1)        # conv1 kh tap 1 -> odd input row
    return np.asarray(rows_e, np.int32), np.asarray(rows_o, np.int32)


_ROWS_E, _ROWS_O = _build_input_row_order()       # each (42,), values in [0, 60)


# ----------------------------- Pallas kernel -------------------------------- #

def _encoder_kernel(x_ref, w1_ref, b1_ref, w2_ref, b2_ref, w3_ref, b3_ref,
                    w4_ref, b4_ref, w5_ref, b5_ref, out_ref):
    f32, bf16 = jnp.float32, jnp.bfloat16
    tb = out_ref.shape[1]                                   # images per grid step

    # conv1 (k=2,s=2): both kh taps K-stacked host-side -> ONE banded matmul, K=384.
    a1 = jnp.dot(x_ref[0], w1_ref[...], preferred_element_type=f32)
    a1 = jnp.maximum(a1 + b1_ref[...], 0.0)                 # [42*tb, 256]

    # conv2 (k=2,s=2): its two kh taps are the two contiguous 21*tb-row halves of
    # a1; lane-concat the bf16 casts -> ONE matmul with K=512.
    n2 = 21 * tb
    a1c = jnp.concatenate([a1[:n2].astype(bf16), a1[n2:].astype(bf16)], axis=-1)
    a2 = jnp.dot(a1c, w2_ref[...], preferred_element_type=f32)
    a2 = jnp.maximum(a2 + b2_ref[...], 0.0)                 # [21*tb, 256]

    # conv3 (k=3,s=2): three contiguous 7*tb-row tap blocks -> ONE matmul, K=768.
    n3 = 7 * tb
    a2c = jnp.concatenate([a2[0:n3].astype(bf16),
                           a2[n3:2 * n3].astype(bf16),
                           a2[2 * n3:3 * n3].astype(bf16)], axis=-1)
    a3 = jnp.dot(a2c, w3_ref[...], preferred_element_type=f32)
    a3 = jnp.maximum(a3 + b3_ref[...], 0.0)                 # [7*tb, 256] (lanes 224.. = 0)

    # flatten + lin1: the 7 ho blocks are contiguous [tb, 256] slabs; lane-concat
    # into one [tb, 1792] LHS -> ONE matmul (NCHW flatten order baked into w4).
    a3c = jnp.concatenate(
        [a3[ho * tb:(ho + 1) * tb].astype(bf16) for ho in range(7)], axis=-1)
    h = jnp.dot(a3c, w4_ref[...], preferred_element_type=f32)
    h = jnp.maximum(h + b4_ref[...], 0.0)                   # [tb, 128]

    # lin2
    y = jnp.dot(h.astype(bf16), w5_ref[...], preferred_element_type=f32) + b5_ref[...]
    out_ref[0] = y.astype(out_ref.dtype)                    # [tb, 4]


# ------------------------- weight pre-processing ----------------------------- #

def _band_weight(w_conv, dh, w_in, w_out, stride):
    """[w_in*Cin, w_out*Cout] banded matrix for one kh tap of a conv.

    big[win*Cin + ci, wo*Cout + co] = W[co, ci, dh, win - stride*wo]
    """
    wc = np.asarray(w_conv, dtype=np.float32)       # [Cout, Cin, Kh, Kw]
    cout, cin, _, kw = wc.shape
    big = np.zeros((w_in * cin, w_out * cout), dtype=np.float32)
    for wo in range(w_out):
        for dw in range(kw):
            win = stride * wo + dw
            big[win * cin:(win + 1) * cin, wo * cout:(wo + 1) * cout] = wc[:, :, dh, dw].T
    return big


def pack_params(tp, wdtype=jnp.bfloat16):
    """Transform PyTorch-layout params into the kernel's banded/K-stacked form."""
    w1, b1 = tp["conv1"]; w2, b2 = tp["conv2"]; w3, b3 = tp["conv3"]
    w4, b4 = tp["lin1"];  w5, b5 = tp["lin2"]

    # Banded conv weights, kh taps stacked along K so each layer is ONE matmul.
    w1b = np.concatenate([_band_weight(w1, t, 64, 32, 2) for t in range(2)], axis=0)  # [384,256]
    w2b = np.concatenate([_band_weight(w2, t, 32, 16, 2) for t in range(2)], axis=0)  # [512,256]
    w3b = np.concatenate(
        [np.pad(_band_weight(w3, t, 16, 7, 2), ((0, 0), (0, LANES3P - LANES3)))
         for t in range(3)], axis=0)                                                   # [768,256]

    # lin1: reorder PyTorch (c,h,w) flatten to (ho, (wo, c)), pad 224->256 lanes
    # per ho block, flatten to [1792, 128] so it consumes a3c directly.
    w4p = (np.asarray(w4, np.float32).reshape(128, 32, 7, 7)
           .transpose(2, 3, 1, 0).reshape(7, LANES3, 128))
    w4p = np.pad(w4p, ((0, 0), (0, LANES3P - LANES3), (0, 0))).reshape(7 * LANES3P, 128)

    w5p = np.asarray(w5, np.float32).T                                                 # [128,4]

    b3p = np.pad(np.tile(np.asarray(b3, np.float32), 7), (0, LANES3P - LANES3))

    return {
        "w1": jnp.asarray(w1b, wdtype),
        "b1": jnp.asarray(np.tile(np.asarray(b1), 32)[None], jnp.float32),
        "w2": jnp.asarray(w2b, wdtype),
        "b2": jnp.asarray(np.tile(np.asarray(b2), 16)[None], jnp.float32),
        "w3": jnp.asarray(w3b, wdtype),
        "b3": jnp.asarray(b3p[None], jnp.float32),
        "w4": jnp.asarray(w4p, wdtype),
        "b4": jnp.asarray(np.asarray(b4)[None], jnp.float32),
        "w5": jnp.asarray(w5p, wdtype),
        "b5": jnp.asarray(np.asarray(b5)[None], jnp.float32),
    }


def init_torch_params(key):
    """PyTorch-layout params with PyTorch-style uniform(+-1/sqrt(fan_in)) init."""
    def conv_init(k, cout, cin, kh, kw):
        k1, k2 = jax.random.split(k)
        bound = 1.0 / np.sqrt(cin * kh * kw)
        w = jax.random.uniform(k1, (cout, cin, kh, kw), jnp.float32, -bound, bound)
        b = jax.random.uniform(k2, (cout,), jnp.float32, -bound, bound)
        return w, b

    def lin_init(k, fout, fin):
        k1, k2 = jax.random.split(k)
        bound = 1.0 / np.sqrt(fin)
        w = jax.random.uniform(k1, (fout, fin), jnp.float32, -bound, bound)
        b = jax.random.uniform(k2, (fout,), jnp.float32, -bound, bound)
        return w, b

    ks = jax.random.split(key, 5)
    return {
        "conv1": conv_init(ks[0], 8, 3, 2, 2),
        "conv2": conv_init(ks[1], 16, 8, 2, 2),
        "conv3": conv_init(ks[2], 32, 16, 3, 3),
        "lin1": lin_init(ks[3], 128, 7 * 7 * 32),
        "lin2": lin_init(ks[4], 4, 128),
    }


# ------------------------------ forward pass --------------------------------- #

def encoder_forward(kp, x_nchw, *, tb=16):
    assert tb % 8 == 0, "tb must be a multiple of 8 (sublane alignment)"
    B = x_nchw.shape[0]
    assert x_nchw.shape[1:] == (3, 64, 64), x_nchw.shape
    g = -(-B // tb)                 # grid length
    bp = g * tb                     # padded batch

    # Host-side prep: bf16 first (halves HBM traffic), one row gather that bakes
    # in the tap ordering AND K-stacks conv1's two kh taps along the lane axis,
    # then interleave the tb images of each grid step (row index = j*tb + b).
    x = x_nchw.astype(jnp.bfloat16)
    if bp != B:
        x = jnp.pad(x, ((0, bp - B), (0, 0), (0, 0), (0, 0)))
    xr = jnp.transpose(x, (0, 2, 3, 1)).reshape(bp, 64, 64 * 3)             # NHWC rows
    xg = jnp.concatenate([xr[:, _ROWS_E, :], xr[:, _ROWS_O, :]], axis=-1)   # [bp,42,384]
    xg = xg.reshape(g, tb, NJ, 384).transpose(0, 2, 1, 3).reshape(g, NJ * tb, 384)

    const2 = lambda i: (0, 0)
    out = pl.pallas_call(
        _encoder_kernel,
        out_shape=jax.ShapeDtypeStruct((g, tb, 4), jnp.float32),
        grid=(g,),
        in_specs=[
            pl.BlockSpec((1, NJ * tb, 384), lambda i: (i, 0, 0)),              # gathered input
            pl.BlockSpec((384, 256), const2), pl.BlockSpec((1, 256), const2),  # conv1
            pl.BlockSpec((512, 256), const2), pl.BlockSpec((1, 256), const2),  # conv2
            pl.BlockSpec((768, 256), const2), pl.BlockSpec((1, 256), const2),  # conv3
            pl.BlockSpec((7 * 256, 128), const2), pl.BlockSpec((1, 128), const2),  # lin1
            pl.BlockSpec((128, 4), const2), pl.BlockSpec((1, 4), const2),      # lin2
        ],
        out_specs=pl.BlockSpec((1, tb, 4), lambda i: (i, 0, 0)),
        compiler_params=pltpu.CompilerParams(dimension_semantics=("parallel",)),
    )(xg, kp["w1"], kp["b1"], kp["w2"], kp["b2"], kp["w3"], kp["b3"],
      kp["w4"], kp["b4"], kp["w5"], kp["b5"])
    return out.reshape(bp, 4)[:B]


# --------------------------- pure-JAX reference ------------------------------ #

def encoder_reference(tp, x):
    w1, b1 = tp["conv1"]; w2, b2 = tp["conv2"]; w3, b3 = tp["conv3"]
    w4, b4 = tp["lin1"];  w5, b5 = tp["lin2"]

    def conv(x, w, b, s):
        y = lax.conv_general_dilated(x, w, (s, s), "VALID",
                                     dimension_numbers=("NCHW", "OIHW", "NCHW"))
        return jax.nn.relu(y + b[None, :, None, None])

    y = conv(x, w1, b1, 2)
    y = conv(y, w2, b2, 2)
    y = conv(y, w3, b3, 2)
    y = y.reshape(y.shape[0], -1)          # NCHW flatten, like nn.Flatten
    y = jax.nn.relu(y @ w4.T + b4)
    return y @ w5.T + b5


# ---------------------------------- main -------------------------------------- #

if __name__ == "__main__":
    key = jax.random.PRNGKey(0)
    pkey, xkey = jax.random.split(key)
    torch_params = init_torch_params(pkey)
    kparams = pack_params(torch_params)

    # 64x64 RGB inputs (module geometry: 64 -> 32 -> 16 -> 7x7). Batch 16 with
    # tb=8 images per grid step -> 2 grid steps (both TensorCores busy on v7x).
    x = jax.random.normal(xkey, (16, 3, 64, 64), dtype=jnp.float32)  # NCHW

    fwd = jax.jit(functools.partial(encoder_forward, tb=8))
    out = jax.block_until_ready(fwd(kparams, x))
    assert out.shape == (16, 4) and out.dtype == jnp.float32, (out.shape, out.dtype)

    # Verify against a plain-JAX f32 reference; the kernel uses bf16 MXU matmuls
    # with f32 accumulation, hence the loose-but-meaningful tolerance.
    ref = jax.block_until_ready(jax.jit(encoder_reference)(torch_params, x))
    np.testing.assert_allclose(np.asarray(out), np.asarray(ref), rtol=5e-2, atol=5e-2)

    print("KERNEL_OK")
</pallas_src>

<mosaic_0001>
module attributes {stable_mosaic.version = 11 : i64} {
  func.func @_encoder_kernel(%arg0: i32, %arg1: memref<1x336x384xbf16, #tpu.memory_space<vmem>>, %arg2: memref<384x256xbf16, #tpu.memory_space<vmem>>, %arg3: memref<1x256xf32, #tpu.memory_space<vmem>>, %arg4: memref<512x256xbf16, #tpu.memory_space<vmem>>, %arg5: memref<1x256xf32, #tpu.memory_space<vmem>>, %arg6: memref<768x256xbf16, #tpu.memory_space<vmem>>, %arg7: memref<1x256xf32, #tpu.memory_space<vmem>>, %arg8: memref<1792x128xbf16, #tpu.memory_space<vmem>>, %arg9: memref<1x128xf32, #tpu.memory_space<vmem>>, %arg10: memref<128x4xbf16, #tpu.memory_space<vmem>>, %arg11: memref<1x4xf32, #tpu.memory_space<vmem>>, %arg12: memref<1x8x4xf32, #tpu.memory_space<vmem>>) attributes {dimension_semantics = [#tpu.dimension_semantics<parallel>], iteration_bounds = array<i64: 2>, scalar_prefetch = 0 : i64, scratch_operands = 0 : i64, tpu.core_type = #tpu.core_type<tc>, window_params = [{transform_indices = @transform_0, window_bounds = array<i64: 1, 336, 384>}, {pipeline_mode = #tpu.pipeline_mode<synchronous>, transform_indices = @transform_1, window_bounds = array<i64: 384, 256>}, {pipeline_mode = #tpu.pipeline_mode<synchronous>, transform_indices = @transform_2, window_bounds = array<i64: 1, 256>}, {pipeline_mode = #tpu.pipeline_mode<synchronous>, transform_indices = @transform_3, window_bounds = array<i64: 512, 256>}, {pipeline_mode = #tpu.pipeline_mode<synchronous>, transform_indices = @transform_4, window_bounds = array<i64: 1, 256>}, {pipeline_mode = #tpu.pipeline_mode<synchronous>, transform_indices = @transform_5, window_bounds = array<i64: 768, 256>}, {pipeline_mode = #tpu.pipeline_mode<synchronous>, transform_indices = @transform_6, window_bounds = array<i64: 1, 256>}, {pipeline_mode = #tpu.pipeline_mode<synchronous>, transform_indices = @transform_7, window_bounds = array<i64: 1792, 128>}, {pipeline_mode = #tpu.pipeline_mode<synchronous>, transform_indices = @transform_8, window_bounds = array<i64: 1, 128>}, {pipeline_mode = #tpu.pipeline_mode<synchronous>, transform_indices = @transform_9, window_bounds = array<i64: 128, 4>}, {pipeline_mode = #tpu.pipeline_mode<synchronous>, transform_indices = @transform_10, window_bounds = array<i64: 1, 4>}, {transform_indices = @transform_11, window_bounds = array<i64: 1, 8, 4>}]} {
    %c0 = arith.constant 0 : index
    %c0_0 = arith.constant 0 : index
    %c0_1 = arith.constant 0 : index
    %0 = vector.load %arg1[%c0, %c0_0, %c0_1] : memref<1x336x384xbf16, #tpu.memory_space<vmem>>, vector<1x336x384xbf16>
    %1 = vector.shape_cast %0 : vector<1x336x384xbf16> to vector<336x384xbf16>
    %c0_2 = arith.constant 0 : index
    %c0_3 = arith.constant 0 : index
    %2 = vector.load %arg2[%c0_2, %c0_3] : memref<384x256xbf16, #tpu.memory_space<vmem>>, vector<384x256xbf16>
    %cst = arith.constant dense<0.000000e+00> : vector<336x256xf32>
    %3 = tpu.matmul %1, %2, %cst {dimension_numbers = #tpu.dot_dimension_numbers<[1], [0], [0], [1], [0, 0, 1, 1], [], []>} : vector<336x384xbf16>, vector<384x256xbf16>, vector<336x256xf32> -> vector<336x256xf32>
    %c0_4 = arith.constant 0 : index
    %c0_5 = arith.constant 0 : index
    %4 = vector.load %arg3[%c0_4, %c0_5] : memref<1x256xf32, #tpu.memory_space<vmem>>, vector<1x256xf32>
    %5 = vector.broadcast %4 : vector<1x256xf32> to vector<336x256xf32>
    %6 = arith.addf %3, %5 : vector<336x256xf32>
    %cst_6 = arith.constant 0.000000e+00 : f32
    %7 = vector.broadcast %cst_6 : f32 to vector<336x256xf32>
    %8 = arith.maximumf %6, %7 : vector<336x256xf32>
    %9 = vector.extract_strided_slice %8 {offsets = [0, 0], sizes = [168, 256], strides = [1, 1]} : vector<336x256xf32> to vector<168x256xf32>
    %10 = arith.truncf %9 : vector<168x256xf32> to vector<168x256xbf16>
    %11 = vector.extract_strided_slice %8 {offsets = [168, 0], sizes = [168, 256], strides = [1, 1]} : vector<336x256xf32> to vector<168x256xf32>
    %12 = arith.truncf %11 : vector<168x256xf32> to vector<168x256xbf16>
    %13 = tpu.concatenate %10, %12 in 1 : vector<168x256xbf16>, vector<168x256xbf16> -> vector<168x512xbf16>
    %c0_7 = arith.constant 0 : index
    %c0_8 = arith.constant 0 : index
    %14 = vector.load %arg4[%c0_7, %c0_8] : memref<512x256xbf16, #tpu.memory_space<vmem>>, vector<512x256xbf16>
    %cst_9 = arith.constant dense<0.000000e+00> : vector<168x256xf32>
    %15 = tpu.matmul %13, %14, %cst_9 {dimension_numbers = #tpu.dot_dimension_numbers<[1], [0], [0], [1], [0, 0, 1, 1], [], []>} : vector<168x512xbf16>, vector<512x256xbf16>, vector<168x256xf32> -> vector<168x256xf32>
    %c0_10 = arith.constant 0 : index
    %c0_11 = arith.constant 0 : index
    %16 = vector.load %arg5[%c0_10, %c0_11] : memref<1x256xf32, #tpu.memory_space<vmem>>, vector<1x256xf32>
    %17 = vector.broadcast %16 : vector<1x256xf32> to vector<168x256xf32>
    %18 = arith.addf %15, %17 : vector<168x256xf32>
    %cst_12 = arith.constant 0.000000e+00 : f32
    %19 = vector.broadcast %cst_12 : f32 to vector<168x256xf32>
    %20 = arith.maximumf %18, %19 : vector<168x256xf32>
    %21 = vector.extract_strided_slice %20 {offsets = [0, 0], sizes = [56, 256], strides = [1, 1]} : vector<168x256xf32> to vector<56x256xf32>
    %22 = arith.truncf %21 : vector<56x256xf32> to vector<56x256xbf16>
    %23 = vector.extract_strided_slice %20 {offsets = [56, 0], sizes = [56, 256], strides = [1, 1]} : vector<168x256xf32> to vector<56x256xf32>
    %24 = arith.truncf %23 : vector<56x256xf32> to vector<56x256xbf16>
    %25 = vector.extract_strided_slice %20 {offsets = [112, 0], sizes = [56, 256], strides = [1, 1]} : vector<168x256xf32> to vector<56x256xf32>
    %26 = arith.truncf %25 : vector<56x256xf32> to vector<56x256xbf16>
    %27 = tpu.concatenate %22, %24, %26 in 1 : vector<56x256xbf16>, vector<56x256xbf16>, vector<56x256xbf16> -> vector<56x768xbf16>
    %c0_13 = arith.constant 0 : index
    %c0_14 = arith.constant 0 : index
    %28 = vector.load %arg6[%c0_13, %c0_14] : memref<768x256xbf16, #tpu.memory_space<vmem>>, vector<768x256xbf16>
    %cst_15 = arith.constant dense<0.000000e+00> : vector<56x256xf32>
    %29 = tpu.matmul %27, %28, %cst_15 {dimension_numbers = #tpu.dot_dimension_numbers<[1], [0], [0], [1], [0, 0, 1, 1], [], []>} : vector<56x768xbf16>, vector<768x256xbf16>, vector<56x256xf32> -> vector<56x256xf32>
    %c0_16 = arith.constant 0 : index
    %c0_17 = arith.constant 0 : index
    %30 = vector.load %arg7[%c0_16, %c0_17] : memref<1x256xf32, #tpu.memory_space<vmem>>, vector<1x256xf32>
    %31 = vector.broadcast %30 : vector<1x256xf32> to vector<56x256xf32>
    %32 = arith.addf %29, %31 : vector<56x256xf32>
    %cst_18 = arith.constant 0.000000e+00 : f32
    %33 = vector.broadcast %cst_18 : f32 to vector<56x256xf32>
    %34 = arith.maximumf %32, %33 : vector<56x256xf32>
    %35 = vector.extract_strided_slice %34 {offsets = [0, 0], sizes = [8, 256], strides = [1, 1]} : vector<56x256xf32> to vector<8x256xf32>
    %36 = arith.truncf %35 : vector<8x256xf32> to vector<8x256xbf16>
    %37 = vector.extract_strided_slice %34 {offsets = [8, 0], sizes = [8, 256], strides = [1, 1]} : vector<56x256xf32> to vector<8x256xf32>
    %38 = arith.truncf %37 : vector<8x256xf32> to vector<8x256xbf16>
    %39 = vector.extract_strided_slice %34 {offsets = [16, 0], sizes = [8, 256], strides = [1, 1]} : vector<56x256xf32> to vector<8x256xf32>
    %40 = arith.truncf %39 : vector<8x256xf32> to vector<8x256xbf16>
    %41 = vector.extract_strided_slice %34 {offsets = [24, 0], sizes = [8, 256], strides = [1, 1]} : vector<56x256xf32> to vector<8x256xf32>
    %42 = arith.truncf %41 : vector<8x256xf32> to vector<8x256xbf16>
    %43 = vector.extract_strided_slice %34 {offsets = [32, 0], sizes = [8, 256], strides = [1, 1]} : vector<56x256xf32> to vector<8x256xf32>
    %44 = arith.truncf %43 : vector<8x256xf32> to vector<8x256xbf16>
    %45 = vector.extract_strided_slice %34 {offsets = [40, 0], sizes = [8, 256], strides = [1, 1]} : vector<56x256xf32> to vector<8x256xf32>
    %46 = arith.truncf %45 : vector<8x256xf32> to vector<8x256xbf16>
    %47 = vector.extract_strided_slice %34 {offsets = [48, 0], sizes = [8, 256], strides = [1, 1]} : vector<56x256xf32> to vector<8x256xf32>
    %48 = arith.truncf %47 : vector<8x256xf32> to vector<8x256xbf16>
    %49 = tpu.concatenate %36, %38, %40, %42, %44, %46, %48 in 1 : vector<8x256xbf16>, vector<8x256xbf16>, vector<8x256xbf16>, vector<8x256xbf16>, vector<8x256xbf16>, vector<8x256xbf16>, vector<8x256xbf16> -> vector<8x1792xbf16>
    %c0_19 = arith.constant 0 : index
    %c0_20 = arith.constant 0 : index
    %50 = vector.load %arg8[%c0_19, %c0_20] : memref<1792x128xbf16, #tpu.memory_space<vmem>>, vector<1792x128xbf16>
    %cst_21 = arith.constant dense<0.000000e+00> : vector<8x128xf32>
    %51 = tpu.matmul %49, %50, %cst_21 {dimension_numbers = #tpu.dot_dimension_numbers<[1], [0], [0], [1], [0, 0, 1, 1], [], []>} : vector<8x1792xbf16>, vector<1792x128xbf16>, vector<8x128xf32> -> vector<8x128xf32>
    %c0_22 = arith.constant 0 : index
    %c0_23 = arith.constant 0 : index
    %52 = vector.load %arg9[%c0_22, %c0_23] : memref<1x128xf32, #tpu.memory_space<vmem>>, vector<1x128xf32>
    %53 = vector.broadcast %52 : vector<1x128xf32> to vector<8x128xf32>
    %54 = arith.addf %51, %53 : vector<8x128xf32>
    %cst_24 = arith.constant 0.000000e+00 : f32
    %55 = vector.broadcast %cst_24 : f32 to vector<8x128xf32>
    %56 = arith.maximumf %54, %55 : vector<8x128xf32>
    %57 = arith.truncf %56 : vector<8x128xf32> to vector<8x128xbf16>
    %c0_25 = arith.constant 0 : index
    %c0_26 = arith.constant 0 : index
    %58 = vector.load %arg10[%c0_25, %c0_26] : memref<128x4xbf16, #tpu.memory_space<vmem>>, vector<128x4xbf16>
    %cst_27 = arith.constant dense<0.000000e+00> : vector<8x4xf32>
    %59 = tpu.matmul %57, %58, %cst_27 {dimension_numbers = #tpu.dot_dimension_numbers<[1], [0], [0], [1], [0, 0, 1, 1], [], []>} : vector<8x128xbf16>, vector<128x4xbf16>, vector<8x4xf32> -> vector<8x4xf32>
    %c0_28 = arith.constant 0 : index
    %c0_29 = arith.constant 0 : index
    %60 = vector.load %arg11[%c0_28, %c0_29] : memref<1x4xf32, #tpu.memory_space<vmem>>, vector<1x4xf32>
    %61 = vector.broadcast %60 : vector<1x4xf32> to vector<8x4xf32>
    %62 = arith.addf %59, %61 : vector<8x4xf32>
    %c0_30 = arith.constant 0 : index
    %c0_31 = arith.constant 0 : index
    %c0_32 = arith.constant 0 : index
    %63 = vector.load %arg12[%c0_30, %c0_31, %c0_32] : memref<1x8x4xf32, #tpu.memory_space<vmem>>, vector<1x8x4xf32>
    %64 = vector.shape_cast %63 : vector<1x8x4xf32> to vector<8x4xf32>
    %65 = vector.shape_cast %62 : vector<8x4xf32> to vector<1x8x4xf32>
    tpu.vector_store %arg12[%c0_30, %c0_31, %c0_32], %65 {strides = array<i32>} : memref<1x8x4xf32, #tpu.memory_space<vmem>>, vector<1x8x4xf32>,
    return
  }
  func.func @transform_0(%arg0: i32) -> (i32, i32, i32) {
    %c0_i32 = arith.constant 0 : i32
    %c0_i32_0 = arith.constant 0 : i32
    %c0_i32_1 = arith.constant 0 : i32
    return %arg0, %c0_i32, %c0_i32_0 : i32, i32, i32
  }
  func.func @transform_1(%arg0: i32) -> (i32, i32) {
    %c0_i32 = arith.constant 0 : i32
    %c0_i32_0 = arith.constant 0 : i32
    %c0_i32_1 = arith.constant 0 : i32
    return %c0_i32, %c0_i32_0 : i32, i32
  }
  func.func @transform_2(%arg0: i32) -> (i32, i32) {
    %c0_i32 = arith.constant 0 : i32
    %c0_i32_0 = arith.constant 0 : i32
    %c0_i32_1 = arith.constant 0 : i32
    return %c0_i32, %c0_i32_0 : i32, i32
  }
  func.func @transform_3(%arg0: i32) -> (i32, i32) {
    %c0_i32 = arith.constant 0 : i32
    %c0_i32_0 = arith.constant 0 : i32
    %c0_i32_1 = arith.constant 0 : i32
    return %c0_i32, %c0_i32_0 : i32, i32
  }
  func.func @transform_4(%arg0: i32) -> (i32, i32) {
    %c0_i32 = arith.constant 0 : i32
    %c0_i32_0 = arith.constant 0 : i32
    %c0_i32_1 = arith.constant 0 : i32
    return %c0_i32, %c0_i32_0 : i32, i32
  }
  func.func @transform_5(%arg0: i32) -> (i32, i32) {
    %c0_i32 = arith.constant 0 : i32
    %c0_i32_0 = arith.constant 0 : i32
    %c0_i32_1 = arith.constant 0 : i32
    return %c0_i32, %c0_i32_0 : i32, i32
  }
  func.func @transform_6(%arg0: i32) -> (i32, i32) {
    %c0_i32 = arith.constant 0 : i32
    %c0_i32_0 = arith.constant 0 : i32
    %c0_i32_1 = arith.constant 0 : i32
    return %c0_i32, %c0_i32_0 : i32, i32
  }
  func.func @transform_7(%arg0: i32) -> (i32, i32) {
    %c0_i32 = arith.constant 0 : i32
    %c0_i32_0 = arith.constant 0 : i32
    %c0_i32_1 = arith.constant 0 : i32
    return %c0_i32, %c0_i32_0 : i32, i32
  }
  func.func @transform_8(%arg0: i32) -> (i32, i32) {
    %c0_i32 = arith.constant 0 : i32
    %c0_i32_0 = arith.constant 0 : i32
    %c0_i32_1 = arith.constant 0 : i32
    return %c0_i32, %c0_i32_0 : i32, i32
  }
  func.func @transform_9(%arg0: i32) -> (i32, i32) {
    %c0_i32 = arith.constant 0 : i32
    %c0_i32_0 = arith.constant 0 : i32
    %c0_i32_1 = arith.constant 0 : i32
    return %c0_i32, %c0_i32_0 : i32, i32
  }
  func.func @transform_10(%arg0: i32) -> (i32, i32) {
    %c0_i32 = arith.constant 0 : i32
    %c0_i32_0 = arith.constant 0 : i32
    %c0_i32_1 = arith.constant 0 : i32
    return %c0_i32, %c0_i32_0 : i32, i32
  }
  func.func @transform_11(%arg0: i32) -> (i32, i32, i32) {
    %c0_i32 = arith.constant 0 : i32
    %c0_i32_0 = arith.constant 0 : i32
    %c0_i32_1 = arith.constant 0 : i32
    return %arg0, %c0_i32, %c0_i32_0 : i32, i32, i32
  }
}

</mosaic_0001>

<bundles_post_ra>
// kernel: encoder_forward.1
= control target key start
LH: loop header
LB: loop body
LE: loop exit
PB: predicated region body
PF: predicated region fallthrough
CT: control target
= control target key end

     0   :  { %s6128_s17 = smov 0   ;;  %s7459_s0 = inlined_call_operand.vmem [shape: bf16[2,336,384], index: 0, kind: input, shape index: {}]   ;;  %s7460_s1 = inlined_call_operand.vmem [shape: bf16[384,256], index: 1, kind: input, shape index: {}]   ;;  %s7461_s2 = inlined_call_operand.vmem [shape: f32[1,256], index: 2, kind: input, shape index: {}]   ;;  %s7462_s3 = inlined_call_operand.vmem [shape: bf16[512,256], index: 3, kind: input, shape index: {}]   ;;  %s7463_s4 = inlined_call_operand.vmem [shape: f32[1,256], index: 4, kind: input, shape index: {}]   ;;  %s7464_s5 = inlined_call_operand.vmem [shape: bf16[768,256], index: 5, kind: input, shape index: {}]   ;;  %s7465_s6 = inlined_call_operand.vmem [shape: f32[1,256], index: 6, kind: input, shape index: {}]   ;;  %s7466_s7 = inlined_call_operand.vmem [shape: bf16[1792,128], index: 7, kind: input, shape index: {}]   ;;  %s7467_s8 = inlined_call_operand.vmem [shape: f32[1,128], index: 8, kind: input, shape index: {}]   ;;  %s7468_s9 = inlined_call_operand.vmem [shape: bf16[128,4], index: 9, kind: input, shape index: {}]   ;;  %s7469_s10 = inlined_call_operand.vmem [shape: f32[1,4], index: 10, kind: input, shape index: {}]   ;;  %s7470_s11 = inlined_call_operand.vmem [shape: f32[2,8,4], index: 11, kind: output, shape index: {}]  }
   0x1 LB: > { %s4644_s18 = sadd.s32 4294967295, %s6063_s17   ;;  %p4648_p0 = scmp.ge.s32.totalorder %s6063_s17, 1  ;;  %s6063_s17 = sphi %s6128_s17, %s21_s17  }
   0x2   : > { %p337_p1 = scmp.lt.s32.totalorder %s6063_s17, 3 }
   0x4   : > { %p338_p2 = pnand %p4648_p0, %p337_p1 }
   0x5   : > { %v5541_v0 = vld [vmem:[%s7460_s1 + $0x4] ss:$8 sps:$4 sm:$0xff] (!%p338_p2)   ;;  %v5543_v1 = vld [vmem:[%s7460_s1] ss:$8 sps:$4 sm:$0xff] (!%p338_p2)   ;;  %v5544_v2 = vld [vmem:[%s7460_s1 + $0x14] ss:$8 sps:$4 sm:$0xff] (!%p338_p2)  }
   0x6   : > { %341 = sbr.rel (%p338_p2) target bundleno = 1650 (0x672), region = 64  ;;  %1106 = vmatprep.subr.bf16.mxu0 (!%p338_p2), %v5541_v0  ;;  %v5546_v3 = vld [vmem:[%s7460_s1 + $0x10] ss:$8 sps:$4 sm:$0xff] (!%p338_p2)   ;;  %v5547_v4 = vld [vmem:[%s7460_s1 + $0x24] ss:$8 sps:$4 sm:$0xff] (!%p338_p2)   ;;  %p376_p3 = scmp.lt.s32.totalorder (!%p338_p2), %s4644_s18, 1 }
   0x7   : > { %1107 = vmatpush1.bf16.msra.mxu0 (!%p338_p2), %v5543_v1  ;;  %v5549_v5 = vld [vmem:[%s7460_s1 + $0x20] ss:$8 sps:$4 sm:$0xff] (!%p338_p2)   ;;  %v5550_v6 = vld [vmem:[%s7460_s1 + $0x34] ss:$8 sps:$4 sm:$0xff] (!%p338_p2)   ;;  %v5552_v7 = vld [vmem:[%s7460_s1 + $0x30] ss:$8 sps:$4 sm:$0xff] (!%p338_p2)  }
   0x8   : > { %1108 = vmatprep.subr.bf16.mxu0 (!%p338_p2), %v5544_v2  ;;  %v5553_v8 = vld [vmem:[%s7460_s1 + $0x44] ss:$8 sps:$4 sm:$0xff] (!%p338_p2)   ;;  %v5555_v9 = vld [vmem:[%s7460_s1 + $0x40] ss:$8 sps:$4 sm:$0xff] (!%p338_p2)   ;;  %v5556_v10 = vld [vmem:[%s7460_s1 + $0x54] ss:$8 sps:$4 sm:$0xff] (!%p338_p2)  }
   0x9   : > { %v5558_v11 = vld [vmem:[%s7460_s1 + $0x50] ss:$8 sps:$4 sm:$0xff] (!%p338_p2)   ;;  %v5559_v12 = vld [vmem:[%s7460_s1 + $0x64] ss:$8 sps:$4 sm:$0xff] (!%p338_p2)   ;;  %v5561_v14 = vld [vmem:[%s7460_s1 + $0x60] ss:$8 sps:$4 sm:$0xff] (!%p338_p2)  }
   0xa   : > { %v5562_v15 = vld [vmem:[%s7460_s1 + $0x74] ss:$8 sps:$4 sm:$0xff] (!%p338_p2)   ;;  %v5564_v16 = vld [vmem:[%s7460_s1 + $0x70] ss:$8 sps:$4 sm:$0xff] (!%p338_p2)   ;;  %v5565_v17 = vld [vmem:[%s7460_s1 + $0x84] ss:$8 sps:$4 sm:$0xff] (!%p338_p2)  }
   0xb   : > { %1109 = vmatpush1.bf16.msra.mxu0 (!%p338_p2), %v5546_v3  ;;  %v5567_v18 = vld [vmem:[%s7460_s1 + $0x80] ss:$8 sps:$4 sm:$0xff] (!%p338_p2)   ;;  %v5568_v19 = vld [vmem:[%s7460_s1 + $0x94] ss:$8 sps:$4 sm:$0xff] (!%p338_p2)   ;;  %v5570_v20 = vld [vmem:[%s7460_s1 + $0x90] ss:$8 sps:$4 sm:$0xff] (!%p338_p2)  }
   0xc   : > { %1110 = vmatprep.subr.bf16.mxu0 (!%p338_p2), %v5547_v4  ;;  %v5571_v21 = vld [vmem:[%s7460_s1 + $0xa4] ss:$8 sps:$4 sm:$0xff] (!%p338_p2)   ;;  %v5573_v22 = vld [vmem:[%s7460_s1 + $0xa0] ss:$8 sps:$4 sm:$0xff] (!%p338_p2)   ;;  %v5574_v23 = vld [vmem:[%s7460_s1 + $0xb4] ss:$8 sps:$4 sm:$0xff] (!%p338_p2)  }
   0xd   : > { %s7472_s18 = smov (!%p376_p3, %s4644_s18), 1  ;;  %v5576_v24 = vld [vmem:[%s7460_s1 + $0xb0] ss:$8 sps:$4 sm:$0xff]   ;;  %v5577_v25 = vld [vmem:[%s7460_s1 + $0xc4] ss:$8 sps:$4 sm:$0xff]   ;;  %vm6067_vm0 = vmmov 0  }
   0xe   : > { %s5529_s22 = smul.u32 504, %s7472_s18  ;;  %v5579_v26 = vld [vmem:[%s7460_s1 + $0xc0] ss:$8 sps:$4 sm:$0xff]   ;;  %v5580_v27 = vld [vmem:[%s7460_s1 + $0xd4] ss:$8 sps:$4 sm:$0xff]   ;;  %s4650_s13 = sshll.u32 %s7472_s18, 3 }
   0xf   : > { %1111 = vmatpush1.bf16.msra.mxu0 %v5549_v5  ;;  %v5582_v28 = vld [vmem:[%s7460_s1 + $0xd0] ss:$8 sps:$4 sm:$0xff]   ;;  %v5583_v29 = vld [vmem:[%s7460_s1 + $0xe4] ss:$8 sps:$4 sm:$0xff]   ;;  %v5585_v30 = vld [vmem:[%s7460_s1 + $0xe0] ss:$8 sps:$4 sm:$0xff]   ;;  %s384_s20 = scalar_lea.vmem %s7470_s11, %s4650_s13 }
  0x10   : > { %1112 = vmatprep.subr.bf16.mxu0 %v5550_v6  ;;  %s6178_s29 = scalar_lea.vmem %s7459_s0, %s5529_s22  ;;  %v5586_v31 = vld [vmem:[%s7460_s1 + $0xf4] ss:$8 sps:$4 sm:$0xff]   ;;  %v5588_v32 = vld [vmem:[%s7460_s1 + $0xf0] ss:$8 sps:$4 sm:$0xff]   ;;  %v5594_v33 = vld [vmem:[%s7460_s1 + $0x104] ss:$8 sps:$4 sm:$0xff]  }
  0x11   : > { %v5591_v13 = vld [vmem:[%s6178_s29 + $0x4] ss:$12 sps:$4 sm:$0xff]   ;;  %v5589_v34 = vld [vmem:[%s6178_s29] ss:$12 sps:$4 sm:$0xff]   ;;  %v5595_v36 = vld [vmem:[%s6178_s29 + $0x1c] ss:$12 sps:$4 sm:$0xff]  }
  0x12   : > { %1138 = vmatprep.mubr.bf16.mxu0 %v5591_v13  ;;  %v5592_v35 = vld [vmem:[%s7460_s1 + $0x100] ss:$8 sps:$4 sm:$0xff]   ;;  %v5603_v37 = vld [vmem:[%s7460_s1 + $0x114] ss:$8 sps:$4 sm:$0xff]   ;;  %v5601_v38 = vld [vmem:[%s7460_s1 + $0x110] ss:$8 sps:$4 sm:$0xff]  }
  0x13   : > { %1113 = vmatpush1.bf16.msra.mxu0 %v5552_v7  ;;  %v5615_v39 = vld [vmem:[%s7460_s1 + $0x124] ss:$8 sps:$4 sm:$0xff]   ;;  %v5598_v41 = vld [vmem:[%s6178_s29 + $0x34] ss:$12 sps:$4 sm:$0xff]   ;;  %v5624_v44 = vld [vmem:[%s7460_s1 + $0x130] ss:$8 sps:$4 sm:$0xff]  }
  0x14   : > { %1114 = vmatprep.subr.bf16.mxu0 %v5553_v8  ;;  %v5597_v40 = vld [vmem:[%s6178_s29 + $0x18] ss:$12 sps:$4 sm:$0xff]   ;;  %v5613_v42 = vld [vmem:[%s7460_s1 + $0x120] ss:$8 sps:$4 sm:$0xff]   ;;  %v5626_v43 = vld [vmem:[%s7460_s1 + $0x134] ss:$8 sps:$4 sm:$0xff]  }
  0x15   : > { %v5636_v45 = vld [vmem:[%s7460_s1 + $0x144] ss:$8 sps:$4 sm:$0xff]   ;;  %v5600_v46 = vld [vmem:[%s6178_s29 + $0x30] ss:$12 sps:$4 sm:$0xff]   ;;  %v5634_v48 = vld [vmem:[%s7460_s1 + $0x140] ss:$8 sps:$4 sm:$0xff]  }
  0x16   : > { %v5604_v47 = vld [vmem:[%s6178_s29 + $0x4c] ss:$12 sps:$4 sm:$0xff]   ;;  %v5648_v49 = vld [vmem:[%s7460_s1 + $0x154] ss:$8 sps:$4 sm:$0xff]   ;;  %v5607_v53 = vld [vmem:[%s6178_s29 + $0x64] ss:$12 sps:$4 sm:$0xff]  }
  0x17   : > { %1115 = vmatpush1.bf16.msra.mxu0 %v5555_v9  ;;  %v5646_v50 = vld [vmem:[%s7460_s1 + $0x150] ss:$8 sps:$4 sm:$0xff]   ;;  %v5657_v51 = vld [vmem:[%s7460_s1 + $0x164] ss:$8 sps:$4 sm:$0xff]   ;;  %v5606_v52 = vld [vmem:[%s6178_s29 + $0x48] ss:$12 sps:$4 sm:$0xff]  }
  0x18   : > { %1116 = vmatprep.subr.bf16.mxu0 %v5556_v10  ;;  %v5655_v54 = vld [vmem:[%s7460_s1 + $0x160] ss:$8 sps:$4 sm:$0xff]   ;;  %v5669_v55 = vld [vmem:[%s7460_s1 + $0x174] ss:$8 sps:$4 sm:$0xff]   ;;  %v5667_v56 = vld [vmem:[%s7460_s1 + $0x170] ss:$8 sps:$4 sm:$0xff]  }
  0x19   : > { %v5609_v57 = vld [vmem:[%s6178_s29 + $0x60] ss:$12 sps:$4 sm:$0xff]   ;;  %v5610_v58 = vld [vmem:[%s6178_s29 + $0x7c] ss:$12 sps:$4 sm:$0xff]   ;;  %v5612_v59 = vld [vmem:[%s6178_s29 + $0x78] ss:$12 sps:$4 sm:$0xff]  }
  0x1a   : > { %v5616_v60 = vld [vmem:[%s6178_s29 + $0x94] ss:$12 sps:$4 sm:$0xff]   ;;  %v5618_v61 = vld [vmem:[%s6178_s29 + $0x90] ss:$12 sps:$4 sm:$0xff]   ;;  %v5619_v62 = vld [vmem:[%s6178_s29 + $0xac] ss:$12 sps:$4 sm:$0xff]  }
  0x1b   : > { %1117 = vmatpush1.bf16.msra.mxu0 %v5558_v11  ;;  %v5621_v63 = vld [vmem:[%s6178_s29 + $0xa8] ss:$12 sps:$4 sm:$0xff]   ;;  %v5622_v0 = vld [vmem:[%s6178_s29 + $0xc4] ss:$12 sps:$4 sm:$0xff]   ;;  %v5627_v1 = vld [vmem:[%s6178_s29 + $0xc0] ss:$12 sps:$4 sm:$0xff]  }
  0x1c   : > { %1118 = vmatprep.subr.bf16.mxu0 %v5559_v12  ;;  %v5628_v2 = vld [vmem:[%s6178_s29 + $0xdc] ss:$12 sps:$4 sm:$0xff]   ;;  %v5630_v3 = vld [vmem:[%s6178_s29 + $0xd8] ss:$12 sps:$4 sm:$0xff]   ;;  %v5631_v4 = vld [vmem:[%s6178_s29 + $0xf4] ss:$12 sps:$4 sm:$0xff]  }
  0x1d   : > { %v5633_v5 = vld [vmem:[%s6178_s29 + $0xf0] ss:$12 sps:$4 sm:$0xff]   ;;  %v5637_v6 = vld [vmem:[%s6178_s29 + $0x10c] ss:$12 sps:$4 sm:$0xff]   ;;  %v5639_v7 = vld [vmem:[%s6178_s29 + $0x108] ss:$12 sps:$4 sm:$0xff]  }
  0x1e   : > { %v5640_v8 = vld [vmem:[%s6178_s29 + $0x124] ss:$12 sps:$4 sm:$0xff]   ;;  %v5642_v9 = vld [vmem:[%s6178_s29 + $0x120] ss:$12 sps:$4 sm:$0xff]   ;;  %v5643_v10 = vld [vmem:[%s6178_s29 + $0x13c] ss:$12 sps:$4 sm:$0xff]  }
  0x1f   : > { %1119 = vmatpush1.bf16.msra.mxu0 %v5561_v14  ;;  %v5645_v11 = vld [vmem:[%s6178_s29 + $0x138] ss:$12 sps:$4 sm:$0xff]   ;;  %v5649_v12 = vld [vmem:[%s6178_s29 + $0x154] ss:$12 sps:$4 sm:$0xff]   ;;  %v5651_v13 = vld [vmem:[%s6178_s29 + $0x150] ss:$12 sps:$4 sm:$0xff]  }
  0x20   : > { %1120 = vmatprep.subr.bf16.mxu0 %v5562_v15  ;;  %v5652_v14 = vld [vmem:[%s6178_s29 + $0x16c] ss:$12 sps:$4 sm:$0xff]   ;;  %v5654_v15 = vld [vmem:[%s6178_s29 + $0x168] ss:$12 sps:$4 sm:$0xff]   ;;  %vm4589_vm1 = vcmask 31744  }
  0x23   : > { %1121 = vmatpush1.bf16.msra.mxu0 %v5564_v16  ;;  %v5658_v16 = vld [vmem:[%s6178_s29 + $0x184] ss:$12 sps:$4 sm:$0xff]  }
  0x24   : > { %1122 = vmatprep.subr.bf16.mxu0 %v5565_v17  ;;  %v5660_v17 = vld [vmem:[%s6178_s29 + $0x180] ss:$12 sps:$4 sm:$0xff]  }
  0x27   : > { %1123 = vmatpush1.bf16.msra.mxu0 %v5567_v18  ;;  %v5661_v18 = vld [vmem:[%s6178_s29 + $0x19c] ss:$12 sps:$4 sm:$0xff]  }
  0x28   : > { %1124 = vmatprep.subr.bf16.mxu0 %v5568_v19  ;;  %v5663_v19 = vld [vmem:[%s6178_s29 + $0x198] ss:$12 sps:$4 sm:$0xff]  }
  0x2b   : > { %1125 = vmatpush1.bf16.msra.mxu0 %v5570_v20  ;;  %v5664_v20 = vld [vmem:[%s6178_s29 + $0x1b4] ss:$12 sps:$4 sm:$0xff]  }
  0x2c   : > { %1126 = vmatprep.subr.bf16.mxu0 %v5571_v21  ;;  %v5666_v21 = vld [vmem:[%s6178_s29 + $0x1b0] ss:$12 sps:$4 sm:$0xff]  }
  0x2f   : > { %1127 = vmatpush1.bf16.msra.mxu0 %v5573_v22  ;;  %v5670_v22 = vld [vmem:[%s6178_s29 + $0x1cc] ss:$12 sps:$4 sm:$0xff]  }
  0x30   : > { %1128 = vmatprep.subr.bf16.mxu0 %v5574_v23  ;;  %v5672_v23 = vld [vmem:[%s6178_s29 + $0x1c8] ss:$12 sps:$4 sm:$0xff]  }
  0x33   : > { %1129 = vmatpush1.bf16.msra.mxu0 %v5576_v24  ;;  %v5673_v24 = vld [vmem:[%s6178_s29 + $0x1e4] ss:$12 sps:$4 sm:$0xff]  }
  0x34   : > { %1130 = vmatprep.subr.bf16.mxu0 %v5577_v25  ;;  %v5675_v25 = vld [vmem:[%s6178_s29 + $0x1e0] ss:$12 sps:$4 sm:$0xff]  }
  0x37   : > { %1131 = vmatpush1.bf16.msra.mxu0 %v5579_v26  ;;  %v6065_v26 = vmov 0  }
  0x38   : > { %1132 = vmatprep.subr.bf16.mxu0 %v5580_v27  ;;  %v5676_v27 = vld [vmem:[%s6178_s29 + $0x8] ss:$12 sps:$4 sm:$0xff]  }
  0x3b   : > { %1133 = vmatpush1.bf16.msra.mxu0 %v5582_v28  ;;  %v5677_v28 = vld [vmem:[%s6178_s29 + $0x20] ss:$12 sps:$4 sm:$0xff]  }
  0x3c   : > { %1134 = vmatprep.subr.bf16.mxu0 %v5583_v29  ;;  %v5678_v29 = vld [vmem:[%s6178_s29 + $0x38] ss:$12 sps:$4 sm:$0xff]  }
  0x3f   : > { %1135 = vmatpush1.bf16.msra.mxu0 %v5585_v30  ;;  %v5679_v30 = vld [vmem:[%s6178_s29 + $0x50] ss:$12 sps:$4 sm:$0xff]  }
  0x40   : > { %1136 = vmatprep.subr.bf16.mxu0 %v5586_v31  ;;  %v5696_v31 = vld [vmem:[%s7462_s3 + $0x4] ss:$8 sps:$4 sm:$0xff]  }
  0x41   : > { %2116 = vmatprep.subr.bf16.mxu1 %v5696_v31 }
  0x43   : > { %1137 = vmatpush1.bf16.msra.mxu0 %v5588_v32  ;;  %v5698_v32 = vld [vmem:[%s7462_s3] ss:$8 sps:$4 sm:$0xff]  }
  0x44   : > { %1349 = vmatprep.subr.bf16.mxu0 %v5594_v33  ;;  %2117 = vmatpush1.bf16.msra.mxu1 %v5698_v32  ;;  %v5680_v33 = vld [vmem:[%s6178_s29 + $0x68] ss:$12 sps:$4 sm:$0xff]  }
  0x46   : > { %1139 = vmatmul.mubr.bf16.vlgmr.msra.gmra.mrb[0].mxu0 %v5589_v34  ;;  %v5700_v34 = vld [vmem:[%s7462_s3 + $0x14] ss:$8 sps:$4 sm:$0xff]  }
  0x47   : > { %1350 = vmatpush1.bf16.msra.mxu0 %v5592_v35  ;;  %1148 = vmatprep.mubr.bf16.mxu0 %v5595_v36  ;;  %v5702_v35 = vld [vmem:[%s7462_s3 + $0x10] ss:$8 sps:$4 sm:$0xff]   ;;  %v5703_v36 = vld [vmem:[%s7462_s3 + $0x24] ss:$8 sps:$4 sm:$0xff]  }
  0x48   : > { %1351 = vmatprep.subr.bf16.mxu0 %v5603_v37  ;;  %2118 = vmatprep.subr.bf16.mxu1 %v5700_v34  ;;  %v5705_v37 = vld [vmem:[%s7462_s3 + $0x20] ss:$8 sps:$4 sm:$0xff]  }
  0x49   : > { %2119 = vmatpush1.bf16.msra.mxu1 %v5702_v35 }
  0x4a   : > { %2120 = vmatprep.subr.bf16.mxu1 %v5703_v36 }
  0x4b   : > { %1352 = vmatpush1.bf16.msra.mxu0 %v5601_v38  ;;  %v5681_v38 = vld [vmem:[%s6178_s29 + $0x80] ss:$12 sps:$4 sm:$0xff]  }
  0x4c   : > { %1353 = vmatprep.subr.bf16.mxu0 %v5615_v39  ;;  %v5706_v39 = vld [vmem:[%s7462_s3 + $0x34] ss:$8 sps:$4 sm:$0xff]  }
  0x4d   : > { %2121 = vmatpush1.bf16.msra.mxu1 %v5705_v37 }
  0x4e   : > { %1149 = vmatmul.mubr.bf16.gmra.mrb[4].mxu0 %v5597_v40  ;;  %v5708_v40 = vld [vmem:[%s7462_s3 + $0x30] ss:$8 sps:$4 sm:$0xff]   ;;  %2122 = vmatprep.subr.bf16.mxu1 %v5706_v39  ;;  %v5745_v39 = vld [vmem:[%s7462_s3 + $0x100] ss:$8 sps:$4 sm:$0xff]  }
  0x4f   : > { %1158 = vmatprep.mubr.bf16.mxu0 %v5598_v41  ;;  %1354 = vmatpush1.bf16.msra.mxu0 %v5613_v42  ;;  %v5709_v41 = vld [vmem:[%s7462_s3 + $0x44] ss:$8 sps:$4 sm:$0xff]   ;;  %v5711_v42 = vld [vmem:[%s7462_s3 + $0x40] ss:$8 sps:$4 sm:$0xff]  }
  0x50   : > { %1355 = vmatprep.subr.bf16.mxu0 %v5626_v43  ;;  %v5682_v43 = vld [vmem:[%s6178_s29 + $0x98] ss:$12 sps:$4 sm:$0xff]  }
  0x51   : > { %2123 = vmatpush1.bf16.msra.mxu1 %v5708_v40 }
  0x52   : > { %2124 = vmatprep.subr.bf16.mxu1 %v5709_v41 }
  0x53   : > { %1356 = vmatpush1.bf16.msra.mxu0 %v5624_v44  ;;  %v5712_v44 = vld [vmem:[%s7462_s3 + $0x54] ss:$8 sps:$4 sm:$0xff]  }
  0x54   : > { %1357 = vmatprep.subr.bf16.mxu0 %v5636_v45  ;;  %v5714_v45 = vld [vmem:[%s7462_s3 + $0x50] ss:$8 sps:$4 sm:$0xff]  }
  0x55   : > { %2125 = vmatpush1.bf16.msra.mxu1 %v5711_v42  ;;  %v5750_v42 = vld [vmem:[%s7462_s3 + $0x114] ss:$8 sps:$4 sm:$0xff]  }
  0x56   : > { %1159 = vmatmul.mubr.bf16.gmra.mrb[8].mxu0 %v5600_v46  ;;  %2126 = vmatprep.subr.bf16.mxu1 %v5712_v44  ;;  %v5715_v46 = vld [vmem:[%s7462_s3 + $0x64] ss:$8 sps:$4 sm:$0xff]  }
  0x57   : > { %1168 = vmatprep.mubr.bf16.mxu0 %v5604_v47  ;;  %1358 = vmatpush1.bf16.msra.mxu0 %v5634_v48  ;;  %v5717_v47 = vld [vmem:[%s7462_s3 + $0x60] ss:$8 sps:$4 sm:$0xff]   ;;  %v5683_v48 = vld [vmem:[%s6178_s29 + $0xb0] ss:$12 sps:$4 sm:$0xff]  }
  0x58   : > { %1359 = vmatprep.subr.bf16.mxu0 %v5648_v49  ;;  %v5718_v49 = vld [vmem:[%s7462_s3 + $0x74] ss:$8 sps:$4 sm:$0xff]  }
  0x59   : > { %2127 = vmatpush1.bf16.msra.mxu1 %v5714_v45 }
  0x5a   : > { %2128 = vmatprep.subr.bf16.mxu1 %v5715_v46 }
  0x5b   : > { %1360 = vmatpush1.bf16.msra.mxu0 %v5646_v50  ;;  %v5720_v50 = vld [vmem:[%s7462_s3 + $0x70] ss:$8 sps:$4 sm:$0xff]  }
  0x5c   : > { %1361 = vmatprep.subr.bf16.mxu0 %v5657_v51  ;;  %v5721_v51 = vld [vmem:[%s7462_s3 + $0x84] ss:$8 sps:$4 sm:$0xff]  }
  0x5d   : > { %2129 = vmatpush1.bf16.msra.mxu1 %v5717_v47 }
  0x5e   : > { %1169 = vmatmul.mubr.bf16.gmra.mrb[12].mxu0 %v5606_v52  ;;  %2130 = vmatprep.subr.bf16.mxu1 %v5718_v49  ;;  %v5723_v52 = vld [vmem:[%s7462_s3 + $0x80] ss:$8 sps:$4 sm:$0xff]  }
  0x5f   : > { %1178 = vmatprep.mubr.bf16.mxu0 %v5607_v53  ;;  %1362 = vmatpush1.bf16.msra.mxu0 %v5655_v54  ;;  %v5684_v53 = vld [vmem:[%s6178_s29 + $0xc8] ss:$12 sps:$4 sm:$0xff]  }
  0x60   : > { %1363 = vmatprep.subr.bf16.mxu0 %v5669_v55  ;;  %v5724_v54 = vld [vmem:[%s7462_s3 + $0x94] ss:$8 sps:$4 sm:$0xff]   ;;  %v5726_v55 = vld [vmem:[%s7462_s3 + $0x90] ss:$8 sps:$4 sm:$0xff]  }
  0x61   : > { %2131 = vmatpush1.bf16.msra.mxu1 %v5720_v50 }
  0x62   : > { %2132 = vmatprep.subr.bf16.mxu1 %v5721_v51  ;;  %v5753_v51 = vld [vmem:[%s7462_s3 + $0x124] ss:$8 sps:$4 sm:$0xff]  }
  0x63   : > { %1364 = vmatpush1.bf16.msra.mxu0 %v5667_v56  ;;  %v5727_v56 = vld [vmem:[%s7462_s3 + $0xa4] ss:$8 sps:$4 sm:$0xff]  }
  0x65   : > { %2133 = vmatpush1.bf16.msra.mxu1 %v5723_v52 }
  0x66   : > { %1179 = vmatmul.mubr.bf16.gmra.mrb[16].mxu0 %v5609_v57  ;;  %2134 = vmatprep.subr.bf16.mxu1 %v5724_v54  ;;  %v5729_v57 = vld [vmem:[%s7462_s3 + $0xa0] ss:$8 sps:$4 sm:$0xff]  }
  0x67   : > { %1188 = vmatprep.mubr.bf16.mxu0 %v5610_v58  ;;  %v5685_v58 = vld [vmem:[%s6178_s29 + $0xe0] ss:$12 sps:$4 sm:$0xff]  }
  0x69   : > { %2135 = vmatpush1.bf16.msra.mxu1 %v5726_v55 }
  0x6a   : > { %2136 = vmatprep.subr.bf16.mxu1 %v5727_v56 }
  0x6d   : > { %2137 = vmatpush1.bf16.msra.mxu1 %v5729_v57  ;;  %v5751_v57 = vld [vmem:[%s7462_s3 + $0x120] ss:$8 sps:$4 sm:$0xff]  }
  0x6e   : > { %1189 = vmatmul.mubr.bf16.gmra.mrb[20].mxu0 %v5612_v59  ;;  %v5730_v59 = vld [vmem:[%s7462_s3 + $0xb4] ss:$8 sps:$4 sm:$0xff]  }
  0x6f   : > { %1198 = vmatprep.mubr.bf16.mxu0 %v5616_v60  ;;  %v5732_v60 = vld [vmem:[%s7462_s3 + $0xb0] ss:$8 sps:$4 sm:$0xff]   ;;  %2138 = vmatprep.subr.bf16.mxu1 %v5730_v59 }
  0x71   : > { %2139 = vmatpush1.bf16.msra.mxu1 %v5732_v60  ;;  %v5756_v60 = vld [vmem:[%s7462_s3 + $0x134] ss:$8 sps:$4 sm:$0xff]  }
  0x76   : > { %1199 = vmatmul.mubr.bf16.gmra.mrb[24].mxu0 %v5618_v61  ;;  %v5733_v61 = vld [vmem:[%s7462_s3 + $0xc4] ss:$8 sps:$4 sm:$0xff]  }
  0x77   : > { %1208 = vmatprep.mubr.bf16.mxu0 %v5619_v62  ;;  %v5735_v62 = vld [vmem:[%s7462_s3 + $0xc0] ss:$8 sps:$4 sm:$0xff]   ;;  %2140 = vmatprep.subr.bf16.mxu1 %v5733_v61 }
  0x78   : > { %2141 = vmatpush1.bf16.msra.mxu1 %v5735_v62 }
  0x7e   : > { %1209 = vmatmul.mubr.bf16.gmra.mrb[28].mxu0 %v5621_v63  ;;  %v5686_v63 = vld [vmem:[%s6178_s29 + $0xf8] ss:$12 sps:$4 sm:$0xff]  }
  0x7f   : > { %1218 = vmatprep.mubr.bf16.mxu0 %v5622_v0  ;;  %v5736_v0 = vld [vmem:[%s7462_s3 + $0xd4] ss:$8 sps:$4 sm:$0xff]  }
  0x80   : > { %2142 = vmatprep.subr.bf16.mxu1 %v5736_v0 }
  0x86   : > { %1219 = vmatmul.mubr.bf16.gmra.mrb[32].mxu0 %v5627_v1  ;;  %v5738_v1 = vld [vmem:[%s7462_s3 + $0xd0] ss:$8 sps:$4 sm:$0xff]  }
  0x87   : > { %1228 = vmatprep.mubr.bf16.mxu0 %v5628_v2  ;;  %2143 = vmatpush1.bf16.msra.mxu1 %v5738_v1  ;;  %v5687_v2 = vld [vmem:[%s6178_s29 + $0x110] ss:$12 sps:$4 sm:$0xff]  }
  0x8e   : > { %1229 = vmatmul.mubr.bf16.gmra.mrb[36].mxu0 %v5630_v3  ;;  %v5739_v3 = vld [vmem:[%s7462_s3 + $0xe4] ss:$8 sps:$4 sm:$0xff]  }
  0x8f   : > { %1238 = vmatprep.mubr.bf16.mxu0 %v5631_v4  ;;  %v5741_v4 = vld [vmem:[%s7462_s3 + $0xe0] ss:$8 sps:$4 sm:$0xff]   ;;  %2144 = vmatprep.subr.bf16.mxu1 %v5739_v3 }
  0x90   : > { %2145 = vmatpush1.bf16.msra.mxu1 %v5741_v4 }
  0x96   : > { %1239 = vmatmul.mubr.bf16.gmra.mrb[40].mxu0 %v5633_v5  ;;  %v5742_v5 = vld [vmem:[%s7462_s3 + $0xf4] ss:$8 sps:$4 sm:$0xff]  }
  0x97   : > { %1248 = vmatprep.mubr.bf16.mxu0 %v5637_v6  ;;  %v5744_v6 = vld [vmem:[%s7462_s3 + $0xf0] ss:$8 sps:$4 sm:$0xff]   ;;  %2146 = vmatprep.subr.bf16.mxu1 %v5742_v5  ;;  %v5759_v5 = vld [vmem:[%s7462_s3 + $0x144] ss:$8 sps:$4 sm:$0xff]  }
  0x98   : > { %2147 = vmatpush1.bf16.msra.mxu1 %v5744_v6 }
  0x9e   : > { %1249 = vmatmul.mubr.bf16.gmra.mrb[44].mxu0 %v5639_v7  ;;  %v5688_v7 = vld [vmem:[%s6178_s29 + $0x128] ss:$12 sps:$4 sm:$0xff]  }
  0x9f   : > { %1258 = vmatprep.mubr.bf16.mxu0 %v5640_v8  ;;  %v5747_v8 = vld [vmem:[%s7462_s3 + $0x104] ss:$8 sps:$4 sm:$0xff]  }
  0xa0   : > { %2257 = vmatprep.subr.bf16.mxu1 %v5747_v8 }
  0xa6   : > { %1259 = vmatmul.mubr.bf16.gmra.mrb[48].mxu0 %v5642_v9  ;;  %v5689_v9 = vld [vmem:[%s6178_s29 + $0x140] ss:$12 sps:$4 sm:$0xff]  }
  0xa7   : > { %1268 = vmatprep.mubr.bf16.mxu0 %v5643_v10  ;;  %v5690_v10 = vld [vmem:[%s6178_s29 + $0x158] ss:$12 sps:$4 sm:$0xff]  }
  0xae   : > { %1269 = vmatmul.mubr.bf16.gmra.mrb[52].mxu0 %v5645_v11  ;;  %v5691_v11 = vld [vmem:[%s6178_s29 + $0x170] ss:$12 sps:$4 sm:$0xff]  }
  0xaf   : > { %1278 = vmatprep.mubr.bf16.mxu0 %v5649_v12  ;;  %v5692_v12 = vld [vmem:[%s6178_s29 + $0x188] ss:$12 sps:$4 sm:$0xff]  }
  0xb6   : > { %1279 = vmatmul.mubr.bf16.gmra.mrb[56].mxu0 %v5651_v13  ;;  %v5693_v13 = vld [vmem:[%s6178_s29 + $0x1a0] ss:$12 sps:$4 sm:$0xff]  }
  0xb7   : > { %1288 = vmatprep.mubr.bf16.mxu0 %v5652_v14  ;;  %v5694_v14 = vld [vmem:[%s6178_s29 + $0x1b8] ss:$12 sps:$4 sm:$0xff]  }
  0xbe   : > { %1289 = vmatmul.mubr.bf16.gmra.mrb[60].mxu0 %v5654_v15  ;;  %v5695_v15 = vld [vmem:[%s6178_s29 + $0x1d0] ss:$12 sps:$4 sm:$0xff]  }
  0xbf   : > { %1298 = vmatprep.mubr.bf16.mxu0 %v5658_v16  ;;  %v5699_v16 = vld [vmem:[%s6178_s29 + $0x1e8] ss:$12 sps:$4 sm:$0xff]  }
  0xc6   : > { %1299 = vmatmul.mubr.bf16.gmra.mrb[64].mxu0 %v5660_v17  ;;  %v520_v17 = vlaneseq }
  0xc7   : > { %1308 = vmatprep.mubr.bf16.mxu0 %v5661_v18 }
  0xc8   : > { %v521_v18 = vshrl.u32 %v520_v17, 7 }
  0xce   : > { %1309 = vmatmul.mubr.bf16.gmra.mrb[68].mxu0 %v5663_v19  ;;  %v6471_v19 = vsub.s32 0, %v521_v18 }
  0xcf   : > { %1318 = vmatprep.mubr.bf16.mxu0 %v5664_v20  ;;  %v518_v20 = vld [vmem:[%s7461_s2] sm:$0x3] }
  0xd6   : > { %1319 = vmatmul.mubr.bf16.gmra.mrb[72].mxu0 %v5666_v21  ;;  %v6476_v21 = vsub.s32 1, %v521_v18 }
  0xd7   : > { %1328 = vmatprep.mubr.bf16.mxu0 %v5670_v22  ;;  %v6479_v22 = vrot.slane %v518_v20, %v6471_v19 }
  0xde   : > { %1329 = vmatmul.mubr.bf16.gmra.mrb[76].mxu0 %v5672_v23  ;;  %v6482_v23 = vrot.slane %v518_v20, %v6476_v21 }
  0xdf   : > { %1338 = vmatprep.mubr.bf16.mxu0 %v5673_v24 }
  0xe6   : > { %1339 = vmatmul.mubr.bf16.gmra.mrb[80].mxu0 %v5675_v25 }
  0xe7   : > { %1381 = vmatprep.mubr.bf16.mxu0 %v6065_v26 }
  0xee   : > { %1382 = vmatmul.mubr.bf16.vlgmr.msra.gmra.mrb[0].mxu0 %v5676_v27 }
  0xef   : > { %1391 = vmatprep.mubr.bf16.mxu0 %v6065_v26 }
  0xf6   : > { %1392 = vmatmul.mubr.bf16.gmra.mrb[4].mxu0 %v5677_v28 }
  0xf7   : > { %1401 = vmatprep.mubr.bf16.mxu0 %v6065_v26 }
  0xfe   : > { %1402 = vmatmul.mubr.bf16.gmra.mrb[8].mxu0 %v5678_v29 }
  0xff   : > { %1411 = vmatprep.mubr.bf16.mxu0 %v6065_v26 }
 0x106   : > { %1412 = vmatmul.mubr.bf16.gmra.mrb[12].mxu0 %v5679_v30 }
 0x107   : > { %1421 = vmatprep.mubr.bf16.mxu0 %v6065_v26 }
 0x10e   : > { %1422 = vmatmul.mubr.bf16.gmra.mrb[16].mxu0 %v5680_v33 }
 0x10f   : > { %1431 = vmatprep.mubr.bf16.mxu0 %v6065_v26 }
 0x116   : > { %1432 = vmatmul.mubr.bf16.gmra.mrb[20].mxu0 %v5681_v38 }
 0x117   : > { %1441 = vmatprep.mubr.bf16.mxu0 %v6065_v26 }
 0x11e   : > { %1442 = vmatmul.mubr.bf16.gmra.mrb[24].mxu0 %v5682_v43 }
 0x11f   : > { %1451 = vmatprep.mubr.bf16.mxu0 %v6065_v26 }
 0x126   : > { %1452 = vmatmul.mubr.bf16.gmra.mrb[28].mxu0 %v5683_v48  ;;  %v5748_v48 = vld [vmem:[%s7462_s3 + $0x110] ss:$8 sps:$4 sm:$0xff]  }
 0x127   : > { %1461 = vmatprep.mubr.bf16.mxu0 %v6065_v26 }
 0x12e   : > { %1462 = vmatmul.mubr.bf16.gmra.mrb[32].mxu0 %v5684_v53 }
 0x12f   : > { %1471 = vmatprep.mubr.bf16.mxu0 %v6065_v26 }
 0x136   : > { %1472 = vmatmul.mubr.bf16.gmra.mrb[36].mxu0 %v5685_v58 }
 0x137   : > { %1481 = vmatprep.mubr.bf16.mxu0 %v6065_v26 }
 0x13e   : > { %1482 = vmatmul.mubr.bf16.gmra.mrb[40].mxu0 %v5686_v63 }
 0x13f   : > { %1491 = vmatprep.mubr.bf16.mxu0 %v6065_v26 }
 0x146   : > { %1492 = vmatmul.mubr.bf16.gmra.mrb[44].mxu0 %v5687_v2  ;;  %v5754_v2 = vld [vmem:[%s7462_s3 + $0x130] ss:$8 sps:$4 sm:$0xff]  }
 0x147   : > { %1501 = vmatprep.mubr.bf16.mxu0 %v6065_v26 }
 0x14e   : > { %1502 = vmatmul.mubr.bf16.gmra.mrb[48].mxu0 %v5688_v7 }
 0x14f   : > { %1511 = vmatprep.mubr.bf16.mxu0 %v6065_v26 }
 0x156   : > { %1512 = vmatmul.mubr.bf16.gmra.mrb[52].mxu0 %v5689_v9 }
 0x157   : > { %1521 = vmatprep.mubr.bf16.mxu0 %v6065_v26 }
 0x15e   : > { %1522 = vmatmul.mubr.bf16.gmra.mrb[56].mxu0 %v5690_v10 }
 0x15f   : > { %1531 = vmatprep.mubr.bf16.mxu0 %v6065_v26 }
 0x166   : > { %1532 = vmatmul.mubr.bf16.gmra.mrb[60].mxu0 %v5691_v11  ;;  %v5757_v11 = vld [vmem:[%s7462_s3 + $0x140] ss:$8 sps:$4 sm:$0xff]  }
 0x167   : > { %1541 = vmatprep.mubr.bf16.mxu0 %v6065_v26 }
 0x16e   : > { %1542 = vmatmul.mubr.bf16.gmra.mrb[64].mxu0 %v5692_v12 }
 0x16f   : > { %1551 = vmatprep.mubr.bf16.mxu0 %v6065_v26 }
 0x176   : > { %1552 = vmatmul.mubr.bf16.gmra.mrb[68].mxu0 %v5693_v13 }
 0x177   : > { %1561 = vmatprep.mubr.bf16.mxu0 %v6065_v26 }
 0x17e   : > { %1562 = vmatmul.mubr.bf16.gmra.mrb[72].mxu0 %v5694_v14  ;;  %v5762_v14 = vld [vmem:[%s7462_s3 + $0x154] ss:$8 sps:$4 sm:$0xff]  }
 0x17f   : > { %1571 = vmatprep.mubr.bf16.mxu0 %v6065_v26 }
 0x186   : > { %1572 = vmatmul.mubr.bf16.gmra.mrb[76].mxu0 %v5695_v15 }
 0x187   : > { %1581 = vmatprep.mubr.bf16.mxu0 %v6065_v26 }
 0x18e   : > { %1582 = vmatmul.mubr.bf16.gmra.mrb[80].mxu0 %v5699_v16 }
 0x1c1   : > { %v1383_v24 = vpop.f32.mrb[0].mxu0 }
 0x1c2   : > { %v5229_v25 = vadd.f32 %v1383_v24, %v6479_v22  ;;  %v1385_v26 = vpop.f32.mrb[1].mxu0  ;;  %v5760_v24 = vld [vmem:[%s7462_s3 + $0x150] ss:$8 sps:$4 sm:$0xff]  }
 0x1c3   : > { %v5230_v27 = vadd.f32 %v1385_v26, %v6482_v23  ;;  %v1387_v28 = vpop.f32.mrb[2].mxu0 }
 0x1c4   : > { %v5231_v29 = vadd.f32 %v1387_v28, %v6479_v22  ;;  %v1389_v30 = vpop.f32.mrb[3].mxu0  ;;  %v1592_v32 = vmax.f32 %v5229_v25, 0.0 }
 0x1c5   : > { %v5232_v31 = vadd.f32 %v1389_v30, %v6482_v23  ;;  %v1593_v34 = vmax.f32 %v5230_v27, 0.0  ;;  %v5765_v27 = vld [vmem:[%s7462_s3 + $0x164] ss:$8 sps:$4 sm:$0xff]  }
 0x1c6   : > { %v1594_v33 = vmax.f32 %v5231_v29, 0.0 }
 0x1c7   : > { %v1595_v35 = vmax.f32 %v5232_v31, 0.0 }
 0x1c8   : > { %v1676_v36 = vpack.c.bf16 %v1594_v33, %v1592_v32  ;;  %v5763_v33 = vld [vmem:[%s7462_s3 + $0x160] ss:$8 sps:$4 sm:$0xff]  }
 0x1c9   : > { %v1393_v37 = vpop.f32.mrb[4].mxu0  ;;  %v1677_v38 = vpack.c.bf16 %v1595_v35, %v1593_v34 }
 0x1ca   : > { %v5233_v40 = vadd.f32 %v1393_v37, %v6479_v22  ;;  %v1395_v41 = vpop.f32.mrb[5].mxu0 }
 0x1cb   : > { %v5234_v43 = vadd.f32 %v1395_v41, %v6482_v23  ;;  %v1397_v44 = vpop.f32.mrb[6].mxu0  ;;  %2148 = vmatprep.mubr.bf16.mxu1 %v1677_v38 }
 0x1cc   : > { %v5235_v45 = vadd.f32 %v1397_v44, %v6479_v22  ;;  %v1399_v46 = vpop.f32.mrb[7].mxu0  ;;  %2149 = vmatmul.mubr.bf16.vlgmr.msra.gmra.mrb[0].mxu1 %v1676_v36  ;;  %v1596_v49 = vmax.f32 %v5233_v40, 0.0  ;;  %v5768_v36 = vld [vmem:[%s7462_s3 + $0x174] ss:$8 sps:$4 sm:$0xff]  }
 0x1cd   : > { %v5236_v47 = vadd.f32 %v1399_v46, %v6482_v23  ;;  %2258 = vmatpush1.bf16.msra.mxu1 %v5745_v39  ;;  %v1597_v52 = vmax.f32 %v5234_v43, 0.0 }
 0x1ce   : > { %v1598_v50 = vmax.f32 %v5235_v45, 0.0  ;;  %2259 = vmatprep.subr.bf16.mxu1 %v5750_v42  ;;  %v5766_v42 = vld [vmem:[%s7462_s3 + $0x170] ss:$8 sps:$4 sm:$0xff]   ;;  %v5771_v45 = vld [vmem:[%s7462_s3 + $0x184] ss:$8 sps:$4 sm:$0xff]  }
 0x1cf   : > { %v1599_v53 = vmax.f32 %v5236_v47, 0.0 }
 0x1d0   : > { %v1678_v54 = vpack.c.bf16 %v1598_v50, %v1596_v49 }
 0x1d1   : > { %v1679_v55 = vpack.c.bf16 %v1599_v53, %v1597_v52  ;;  %v1403_v56 = vpop.f32.mrb[8].mxu0  ;;  %2260 = vmatpush1.bf16.msra.mxu1 %v5748_v48 }
 0x1d2   : > { %v5237_v58 = vadd.f32 %v1403_v56, %v6479_v22  ;;  %v1405_v59 = vpop.f32.mrb[9].mxu0  ;;  %2261 = vmatprep.subr.bf16.mxu1 %v5753_v51  ;;  %v5769_v51 = vld [vmem:[%s7462_s3 + $0x180] ss:$8 sps:$4 sm:$0xff]  }
 0x1d3   : > { %v5238_v61 = vadd.f32 %v1405_v59, %v6482_v23  ;;  %v1407_v62 = vpop.f32.mrb[10].mxu0  ;;  %2158 = vmatprep.mubr.bf16.mxu1 %v1679_v55 }
 0x1d4   : > { %v5239_v63 = vadd.f32 %v1407_v62, %v6479_v22  ;;  %v1409_v0 = vpop.f32.mrb[11].mxu0  ;;  %2159 = vmatmul.mubr.bf16.gmra.mrb[4].mxu1 %v1678_v54  ;;  %v1600_v3 = vmax.f32 %v5237_v58, 0.0  ;;  %v5774_v54 = vld [vmem:[%s7462_s3 + $0x194] ss:$8 sps:$4 sm:$0xff]  }
 0x1d5   : > { %v5240_v1 = vadd.f32 %v1409_v0, %v6482_v23  ;;  %2262 = vmatpush1.bf16.msra.mxu1 %v5751_v57  ;;  %v1601_v6 = vmax.f32 %v5238_v61, 0.0 }
 0x1d6   : > { %v1602_v4 = vmax.f32 %v5239_v63, 0.0  ;;  %2263 = vmatprep.subr.bf16.mxu1 %v5756_v60  ;;  %v5772_v60 = vld [vmem:[%s7462_s3 + $0x190] ss:$8 sps:$4 sm:$0xff]   ;;  %v5777_v63 = vld [vmem:[%s7462_s3 + $0x1a4] ss:$8 sps:$4 sm:$0xff]  }
 0x1d7   : > { %v1603_v7 = vmax.f32 %v5240_v1, 0.0 }
 0x1d8   : > { %v1680_v8 = vpack.c.bf16 %v1602_v4, %v1600_v3 }
 0x1d9   : > { %v1681_v9 = vpack.c.bf16 %v1603_v7, %v1601_v6  ;;  %v1413_v10 = vpop.f32.mrb[12].mxu0  ;;  %2264 = vmatpush1.bf16.msra.mxu1 %v5754_v2 }
 0x1da   : > { %v5241_v12 = vadd.f32 %v1413_v10, %v6479_v22  ;;  %v1415_v13 = vpop.f32.mrb[13].mxu0  ;;  %2265 = vmatprep.subr.bf16.mxu1 %v5759_v5  ;;  %v5775_v5 = vld [vmem:[%s7462_s3 + $0x1a0] ss:$8 sps:$4 sm:$0xff]  }
 0x1db   : > { %v5242_v15 = vadd.f32 %v1415_v13, %v6482_v23  ;;  %v1417_v16 = vpop.f32.mrb[14].mxu0  ;;  %2168 = vmatprep.mubr.bf16.mxu1 %v1681_v9 }
 0x1dc   : > { %v5243_v17 = vadd.f32 %v1417_v16, %v6479_v22  ;;  %v1419_v18 = vpop.f32.mrb[15].mxu0  ;;  %2169 = vmatmul.mubr.bf16.gmra.mrb[8].mxu1 %v1680_v8  ;;  %v1604_v25 = vmax.f32 %v5241_v12, 0.0  ;;  %v5780_v8 = vld [vmem:[%s7462_s3 + $0x1b4] ss:$8 sps:$4 sm:$0xff]  }
 0x1dd   : > { %v5244_v20 = vadd.f32 %v1419_v18, %v6482_v23  ;;  %2266 = vmatpush1.bf16.msra.mxu1 %v5757_v11  ;;  %v1605_v28 = vmax.f32 %v5242_v15, 0.0 }
 0x1de   : > { %v1606_v26 = vmax.f32 %v5243_v17, 0.0  ;;  %2267 = vmatprep.subr.bf16.mxu1 %v5762_v14  ;;  %v5778_v14 = vld [vmem:[%s7462_s3 + $0x1b0] ss:$8 sps:$4 sm:$0xff]   ;;  %v5783_v17 = vld [vmem:[%s7462_s3 + $0x1c4] ss:$8 sps:$4 sm:$0xff]  }
 0x1df   : > { %v1607_v29 = vmax.f32 %v5244_v20, 0.0 }
 0x1e0   : > { %v1682_v30 = vpack.c.bf16 %v1606_v26, %v1604_v25 }
 0x1e1   : > { %v1683_v31 = vpack.c.bf16 %v1607_v29, %v1605_v28  ;;  %v1423_v32 = vpop.f32.mrb[16].mxu0  ;;  %2268 = vmatpush1.bf16.msra.mxu1 %v5760_v24 }
 0x1e2   : > { %v5245_v34 = vadd.f32 %v1423_v32, %v6479_v22  ;;  %v1425_v35 = vpop.f32.mrb[17].mxu0  ;;  %2269 = vmatprep.subr.bf16.mxu1 %v5765_v27  ;;  %v5781_v27 = vld [vmem:[%s7462_s3 + $0x1c0] ss:$8 sps:$4 sm:$0xff]  }
 0x1e3   : > { %v5246_v37 = vadd.f32 %v1425_v35, %v6482_v23  ;;  %v1427_v38 = vpop.f32.mrb[18].mxu0  ;;  %2178 = vmatprep.mubr.bf16.mxu1 %v1683_v31 }
 0x1e4   : > { %v5247_v39 = vadd.f32 %v1427_v38, %v6479_v22  ;;  %v1429_v40 = vpop.f32.mrb[19].mxu0  ;;  %2179 = vmatmul.mubr.bf16.gmra.mrb[12].mxu1 %v1682_v30  ;;  %v1608_v43 = vmax.f32 %v5245_v34, 0.0  ;;  %v5786_v30 = vld [vmem:[%s7462_s3 + $0x1d4] ss:$8 sps:$4 sm:$0xff]  }
 0x1e5   : > { %v5248_v41 = vadd.f32 %v1429_v40, %v6482_v23  ;;  %2270 = vmatpush1.bf16.msra.mxu1 %v5763_v33  ;;  %v1609_v46 = vmax.f32 %v5246_v37, 0.0 }
 0x1e6   : > { %v1610_v44 = vmax.f32 %v5247_v39, 0.0  ;;  %2271 = vmatprep.subr.bf16.mxu1 %v5768_v36  ;;  %v5784_v36 = vld [vmem:[%s7462_s3 + $0x1d0] ss:$8 sps:$4 sm:$0xff]   ;;  %v5789_v39 = vld [vmem:[%s7462_s3 + $0x1e4] ss:$8 sps:$4 sm:$0xff]  }
 0x1e7   : > { %v1611_v47 = vmax.f32 %v5248_v41, 0.0 }
 0x1e8   : > { %v1684_v48 = vpack.c.bf16 %v1610_v44, %v1608_v43 }
 0x1e9   : > { %v1685_v49 = vpack.c.bf16 %v1611_v47, %v1609_v46  ;;  %v1433_v50 = vpop.f32.mrb[20].mxu0  ;;  %2272 = vmatpush1.bf16.msra.mxu1 %v5766_v42 }
 0x1ea   : > { %v5249_v52 = vadd.f32 %v1433_v50, %v6479_v22  ;;  %v1435_v53 = vpop.f32.mrb[21].mxu0  ;;  %2273 = vmatprep.subr.bf16.mxu1 %v5771_v45  ;;  %v5787_v45 = vld [vmem:[%s7462_s3 + $0x1e0] ss:$8 sps:$4 sm:$0xff]  }
 0x1eb   : > { %v5250_v55 = vadd.f32 %v1435_v53, %v6482_v23  ;;  %v1437_v56 = vpop.f32.mrb[22].mxu0  ;;  %2188 = vmatprep.mubr.bf16.mxu1 %v1685_v49 }
 0x1ec   : > { %v5251_v57 = vadd.f32 %v1437_v56, %v6479_v22  ;;  %v1439_v58 = vpop.f32.mrb[23].mxu0  ;;  %2189 = vmatmul.mubr.bf16.gmra.mrb[16].mxu1 %v1684_v48  ;;  %v1612_v61 = vmax.f32 %v5249_v52, 0.0  ;;  %v5792_v48 = vld [vmem:[%s7462_s3 + $0x1f4] ss:$8 sps:$4 sm:$0xff]  }
 0x1ed   : > { %v5252_v59 = vadd.f32 %v1439_v58, %v6482_v23  ;;  %2274 = vmatpush1.bf16.msra.mxu1 %v5769_v51  ;;  %v1613_v0 = vmax.f32 %v5250_v55, 0.0 }
 0x1ee   : > { %v1614_v62 = vmax.f32 %v5251_v57, 0.0  ;;  %2275 = vmatprep.subr.bf16.mxu1 %v5774_v54  ;;  %v5790_v54 = vld [vmem:[%s7462_s3 + $0x1f0] ss:$8 sps:$4 sm:$0xff]   ;;  %v5795_v57 = vld [vmem:[%s7464_s5 + $0x4] ss:$8 sps:$4 sm:$0xff]  }
 0x1ef   : > { %v1615_v1 = vmax.f32 %v5252_v59, 0.0 }
 0x1f0   : > { %v1686_v2 = vpack.c.bf16 %v1614_v62, %v1612_v61 }
 0x1f1   : > { %v1687_v3 = vpack.c.bf16 %v1615_v1, %v1613_v0  ;;  %v1443_v4 = vpop.f32.mrb[24].mxu0  ;;  %2276 = vmatpush1.bf16.msra.mxu1 %v5772_v60 }
 0x1f2   : > { %v5253_v6 = vadd.f32 %v1443_v4, %v6479_v22  ;;  %v1445_v7 = vpop.f32.mrb[25].mxu0  ;;  %2277 = vmatprep.subr.bf16.mxu1 %v5777_v63 }
 0x1f3   : > { %v5254_v9 = vadd.f32 %v1445_v7, %v6482_v23  ;;  %v1447_v10 = vpop.f32.mrb[26].mxu0  ;;  %2198 = vmatprep.mubr.bf16.mxu1 %v1687_v3 }
 0x1f4   : > { %v5255_v11 = vadd.f32 %v1447_v10, %v6479_v22  ;;  %v1449_v12 = vpop.f32.mrb[27].mxu0  ;;  %2199 = vmatmul.mubr.bf16.gmra.mrb[20].mxu1 %v1686_v2  ;;  %v1616_v15 = vmax.f32 %v5253_v6, 0.0 }
 0x1f5   : > { %v5256_v13 = vadd.f32 %v1449_v12, %v6482_v23  ;;  %2278 = vmatpush1.bf16.msra.mxu1 %v5775_v5  ;;  %v1617_v18 = vmax.f32 %v5254_v9, 0.0 }
 0x1f6   : > { %v1618_v16 = vmax.f32 %v5255_v11, 0.0  ;;  %2279 = vmatprep.subr.bf16.mxu1 %v5780_v8 }
 0x1f7   : > { %v1619_v20 = vmax.f32 %v5256_v13, 0.0 }
 0x1f8   : > { %v1688_v24 = vpack.c.bf16 %v1618_v16, %v1616_v15 }
 0x1f9   : > { %v1689_v25 = vpack.c.bf16 %v1619_v20, %v1617_v18  ;;  %v1453_v26 = vpop.f32.mrb[28].mxu0  ;;  %2280 = vmatpush1.bf16.msra.mxu1 %v5778_v14 }
 0x1fa   : > { %v5257_v28 = vadd.f32 %v1453_v26, %v6479_v22  ;;  %v1455_v29 = vpop.f32.mrb[29].mxu0  ;;  %2281 = vmatprep.subr.bf16.mxu1 %v5783_v17 }
 0x1fb   : > { %v5258_v31 = vadd.f32 %v1455_v29, %v6482_v23  ;;  %v1457_v32 = vpop.f32.mrb[30].mxu0  ;;  %2208 = vmatprep.mubr.bf16.mxu1 %v1689_v25 }
 0x1fc   : > { %v5259_v33 = vadd.f32 %v1457_v32, %v6479_v22  ;;  %v1459_v34 = vpop.f32.mrb[31].mxu0  ;;  %2209 = vmatmul.mubr.bf16.gmra.mrb[24].mxu1 %v1688_v24  ;;  %v1620_v37 = vmax.f32 %v5257_v28, 0.0 }
 0x1fd   : > { %v5260_v35 = vadd.f32 %v1459_v34, %v6482_v23  ;;  %2282 = vmatpush1.bf16.msra.mxu1 %v5781_v27  ;;  %v1621_v40 = vmax.f32 %v5258_v31, 0.0 }
 0x1fe   : > { %v1622_v38 = vmax.f32 %v5259_v33, 0.0  ;;  %2283 = vmatprep.subr.bf16.mxu1 %v5786_v30 }
 0x1ff   : > { %v1623_v41 = vmax.f32 %v5260_v35, 0.0 }
 0x200   : > { %v1690_v42 = vpack.c.bf16 %v1622_v38, %v1620_v37 }
 0x201   : > { %v1691_v43 = vpack.c.bf16 %v1623_v41, %v1621_v40  ;;  %v1463_v44 = vpop.f32.mrb[32].mxu0  ;;  %2284 = vmatpush1.bf16.msra.mxu1 %v5784_v36 }
 0x202   : > { %v5261_v46 = vadd.f32 %v1463_v44, %v6479_v22  ;;  %v1465_v47 = vpop.f32.mrb[33].mxu0  ;;  %2285 = vmatprep.subr.bf16.mxu1 %v5789_v39 }
 0x203   : > { %v5262_v49 = vadd.f32 %v1465_v47, %v6482_v23  ;;  %v1467_v50 = vpop.f32.mrb[34].mxu0  ;;  %2218 = vmatprep.mubr.bf16.mxu1 %v1691_v43  ;;  %v5793_v43 = vld [vmem:[%s7464_s5] ss:$8 sps:$4 sm:$0xff]  }
 0x204   : > { %v5263_v51 = vadd.f32 %v1467_v50, %v6479_v22  ;;  %v1469_v52 = vpop.f32.mrb[35].mxu0  ;;  %2219 = vmatmul.mubr.bf16.gmra.mrb[28].mxu1 %v1690_v42  ;;  %v1624_v55 = vmax.f32 %v5261_v46, 0.0  ;;  %v5798_v46 = vld [vmem:[%s7464_s5 + $0x14] ss:$8 sps:$4 sm:$0xff]  }
 0x205   : > { %v5264_v53 = vadd.f32 %v1469_v52, %v6482_v23  ;;  %2286 = vmatpush1.bf16.msra.mxu1 %v5787_v45  ;;  %v1625_v58 = vmax.f32 %v5262_v49, 0.0 }
 0x206   : > { %v1626_v56 = vmax.f32 %v5263_v51, 0.0  ;;  %2287 = vmatprep.subr.bf16.mxu1 %v5792_v48 }
 0x207   : > { %v1627_v59 = vmax.f32 %v5264_v53, 0.0 }
 0x208   : > { %v1692_v60 = vpack.c.bf16 %v1626_v56, %v1624_v55  ;;  %v5801_v56 = vld [vmem:[%s7464_s5 + $0x24] ss:$8 sps:$4 sm:$0xff]  }
 0x209   : > { %v1693_v61 = vpack.c.bf16 %v1627_v59, %v1625_v58  ;;  %v1473_v62 = vpop.f32.mrb[36].mxu0  ;;  %2288 = vmatpush1.bf16.msra.mxu1 %v5790_v54  ;;  %v5796_v54 = vld [vmem:[%s7464_s5 + $0x10] ss:$8 sps:$4 sm:$0xff]  }
 0x20a   : > { %v5265_v63 = vadd.f32 %v1473_v62, %v6479_v22  ;;  %v1475_v0 = vpop.f32.mrb[37].mxu0  ;;  %3052 = vmatprep.subr.bf16.mxu1 %v5795_v57 }
 0x20b   : > { %v5266_v1 = vadd.f32 %v1475_v0, %v6482_v23  ;;  %v1477_v2 = vpop.f32.mrb[38].mxu0  ;;  %2228 = vmatprep.mubr.bf16.mxu1 %v1693_v61  ;;  %v5799_v61 = vld [vmem:[%s7464_s5 + $0x20] ss:$8 sps:$4 sm:$0xff]   ;;  %v5804_v0 = vld [vmem:[%s7464_s5 + $0x34] ss:$8 sps:$4 sm:$0xff]  }
 0x20c   : > { %v5267_v3 = vadd.f32 %v1477_v2, %v6479_v22  ;;  %v1479_v4 = vpop.f32.mrb[39].mxu0  ;;  %2229 = vmatmul.mubr.bf16.gmra.mrb[32].mxu1 %v1692_v60  ;;  %v1628_v6 = vmax.f32 %v5265_v63, 0.0 }
 0x20d   : > { %v5268_v5 = vadd.f32 %v1479_v4, %v6482_v23  ;;  %v1629_v8 = vmax.f32 %v5266_v1, 0.0 }
 0x20e   : > { %v1630_v7 = vmax.f32 %v5267_v3, 0.0 }
 0x20f   : > { %v1631_v9 = vmax.f32 %v5268_v5, 0.0 }
 0x210   : > { %v1694_v10 = vpack.c.bf16 %v1630_v7, %v1628_v6 }
 0x211   : > { %v1695_v11 = vpack.c.bf16 %v1631_v9, %v1629_v8  ;;  %v1483_v12 = vpop.f32.mrb[40].mxu0  ;;  %v5802_v8 = vld [vmem:[%s7464_s5 + $0x30] ss:$8 sps:$4 sm:$0xff]  }
 0x212   : > { %v5269_v13 = vadd.f32 %v1483_v12, %v6479_v22  ;;  %v1485_v14 = vpop.f32.mrb[41].mxu0 }
 0x213   : > { %v5270_v15 = vadd.f32 %v1485_v14, %v6482_v23  ;;  %v1487_v16 = vpop.f32.mrb[42].mxu0  ;;  %2238 = vmatprep.mubr.bf16.mxu1 %v1695_v11 }
 0x214   : > { %v1489_v17 = vpop.f32.mrb[43].mxu0  ;;  %2239 = vmatmul.mubr.bf16.gmra.mrb[36].mxu1 %v1694_v10  ;;  %v1632_v20 = vmax.f32 %v5269_v13, 0.0  ;;  %v5271_v25 = vadd.f32 %v1487_v16, %v6479_v22  ;;  %v5807_v10 = vld [vmem:[%s7464_s5 + $0x44] ss:$8 sps:$4 sm:$0xff]  }
 0x215   : > { %v1633_v18 = vmax.f32 %v5270_v15, 0.0  ;;  %v5272_v26 = vadd.f32 %v1489_v17, %v6482_v23  ;;  %v5805_v15 = vld [vmem:[%s7464_s5 + $0x40] ss:$8 sps:$4 sm:$0xff]  }
 0x216   : > { %v1696_v28 = vpack.c.bf16 %v1632_v20, %v1632_v20  ;;  %v1634_v33 = vmax.f32 %v5271_v25, 0.0 }
 0x217   : > { %v1697_v24 = vpack.c.bf16 %v1633_v18, %v1633_v18  ;;  %v1635_v36 = vmax.f32 %v5272_v26, 0.0  ;;  %v5810_v18 = vld [vmem:[%s7464_s5 + $0x54] ss:$8 sps:$4 sm:$0xff]  }
 0x219   : > { %v1493_v27 = vpop.f32.mrb[44].mxu0  ;;  %2248 = vmatprep.mubr.bf16.mxu1 %v1697_v24 }
 0x21a   : > { %v5273_v29 = vadd.f32 %v1493_v27, %v6479_v22  ;;  %v1495_v30 = vpop.f32.mrb[45].mxu0 }
 0x21b   : > { %v5274_v31 = vadd.f32 %v1495_v30, %v6482_v23  ;;  %v1497_v32 = vpop.f32.mrb[46].mxu0  ;;  %v5808_v30 = vld [vmem:[%s7464_s5 + $0x50] ss:$8 sps:$4 sm:$0xff]  }
 0x21c   : > { %v1636_v34 = vmax.f32 %v5273_v29, 0.0  ;;  %v1499_v35 = vpop.f32.mrb[47].mxu0  ;;  %2249 = vmatmul.mubr.bf16.gmra.mrb[40].mxu1 %v1696_v28  ;;  %v5275_v40 = vadd.f32 %v1497_v32, %v6479_v22  ;;  %v5813_v32 = vld [vmem:[%s7464_s5 + $0x64] ss:$8 sps:$4 sm:$0xff]  }
 0x21d   : > { %v1637_v37 = vmax.f32 %v5274_v31, 0.0  ;;  %v5276_v41 = vadd.f32 %v1499_v35, %v6482_v23 }
 0x21e   : > { %v1698_v38 = vpack.c.bf16 %v1636_v34, %v1634_v33  ;;  %v1638_v49 = vmax.f32 %v5275_v40, 0.0  ;;  %v5816_v40 = vld [vmem:[%s7464_s5 + $0x74] ss:$8 sps:$4 sm:$0xff]  }
 0x21f   : > { %v1699_v39 = vpack.c.bf16 %v1637_v37, %v1635_v36  ;;  %v1639_v52 = vmax.f32 %v5276_v41, 0.0  ;;  %v5811_v37 = vld [vmem:[%s7464_s5 + $0x60] ss:$8 sps:$4 sm:$0xff]  }
 0x221   : > { %v1503_v42 = vpop.f32.mrb[48].mxu0  ;;  %2289 = vmatprep.mubr.bf16.mxu1 %v1699_v39 }
 0x222   : > { %v5277_v44 = vadd.f32 %v1503_v42, %v6479_v22  ;;  %v1505_v45 = vpop.f32.mrb[49].mxu0 }
 0x223   : > { %v5278_v47 = vadd.f32 %v1505_v45, %v6482_v23  ;;  %v1507_v48 = vpop.f32.mrb[50].mxu0 }
 0x224   : > { %v1640_v50 = vmax.f32 %v5277_v44, 0.0  ;;  %v1509_v51 = vpop.f32.mrb[51].mxu0  ;;  %2290 = vmatmul.mubr.bf16.vlgmr.msra.gmra.mrb[0].mxu1 %v1698_v38  ;;  %v5279_v58 = vadd.f32 %v1507_v48, %v6479_v22  ;;  %v5814_v48 = vld [vmem:[%s7464_s5 + $0x70] ss:$8 sps:$4 sm:$0xff]  }
 0x225   : > { %v1641_v53 = vmax.f32 %v5278_v47, 0.0  ;;  %3053 = vmatpush1.bf16.msra.mxu1 %v5793_v43  ;;  %v5280_v59 = vadd.f32 %v1509_v51, %v6482_v23 }
 0x226   : > { %v1700_v55 = vpack.c.bf16 %v1640_v50, %v1638_v49  ;;  %3054 = vmatprep.subr.bf16.mxu1 %v5798_v46  ;;  %v1642_v3 = vmax.f32 %v5279_v58, 0.0  ;;  %v5819_v50 = vld [vmem:[%s7464_s5 + $0x84] ss:$8 sps:$4 sm:$0xff]   ;;  %v5822_v58 = vld [vmem:[%s7464_s5 + $0x94] ss:$8 sps:$4 sm:$0xff]  }
 0x227   : > { %v1701_v57 = vpack.c.bf16 %v1641_v53, %v1639_v52  ;;  %v1643_v6 = vmax.f32 %v5280_v59, 0.0 }
 0x229   : > { %v1513_v60 = vpop.f32.mrb[52].mxu0  ;;  %2299 = vmatprep.mubr.bf16.mxu1 %v1701_v57  ;;  %3055 = vmatpush1.bf16.msra.mxu1 %v5796_v54 }
 0x22a   : > { %v5281_v62 = vadd.f32 %v1513_v60, %v6479_v22  ;;  %v1515_v63 = vpop.f32.mrb[53].mxu0  ;;  %3056 = vmatprep.subr.bf16.mxu1 %v5801_v56 }
 0x22b   : > { %v5282_v1 = vadd.f32 %v1515_v63, %v6482_v23  ;;  %v1517_v2 = vpop.f32.mrb[54].mxu0 }
 0x22c   : > { %v1644_v4 = vmax.f32 %v5281_v62, 0.0  ;;  %v1519_v5 = vpop.f32.mrb[55].mxu0  ;;  %2300 = vmatmul.mubr.bf16.gmra.mrb[4].mxu1 %v1700_v55  ;;  %v5283_v12 = vadd.f32 %v1517_v2, %v6479_v22  ;;  %v5817_v55 = vld [vmem:[%s7464_s5 + $0x80] ss:$8 sps:$4 sm:$0xff]   ;;  %v5820_v2 = vld [vmem:[%s7464_s5 + $0x90] ss:$8 sps:$4 sm:$0xff]  }
 0x22d   : > { %v1645_v7 = vmax.f32 %v5282_v1, 0.0  ;;  %3057 = vmatpush1.bf16.msra.mxu1 %v5799_v61  ;;  %v5284_v13 = vadd.f32 %v1519_v5, %v6482_v23 }
 0x22e   : > { %v1702_v9 = vpack.c.bf16 %v1644_v4, %v1642_v3  ;;  %3058 = vmatprep.subr.bf16.mxu1 %v5804_v0  ;;  %v1646_v25 = vmax.f32 %v5283_v12, 0.0  ;;  %v5825_v4 = vld [vmem:[%s7464_s5 + $0xa4] ss:$8 sps:$4 sm:$0xff]   ;;  %v5828_v12 = vld [vmem:[%s7464_s5 + $0xb4] ss:$8 sps:$4 sm:$0xff]  }
 0x22f   : > { %v1703_v11 = vpack.c.bf16 %v1645_v7, %v1643_v6  ;;  %v1647_v28 = vmax.f32 %v5284_v13, 0.0 }
 0x231   : > { %v1523_v14 = vpop.f32.mrb[56].mxu0  ;;  %2309 = vmatprep.mubr.bf16.mxu1 %v1703_v11  ;;  %3059 = vmatpush1.bf16.msra.mxu1 %v5802_v8 }
 0x232   : > { %v5285_v16 = vadd.f32 %v1523_v14, %v6479_v22  ;;  %v1525_v17 = vpop.f32.mrb[57].mxu0  ;;  %3060 = vmatprep.subr.bf16.mxu1 %v5807_v10 }
 0x233   : > { %v5286_v20 = vadd.f32 %v1525_v17, %v6482_v23  ;;  %v1527_v24 = vpop.f32.mrb[58].mxu0 }
 0x234   : > { %v1648_v26 = vmax.f32 %v5285_v16, 0.0  ;;  %v1529_v27 = vpop.f32.mrb[59].mxu0  ;;  %2310 = vmatmul.mubr.bf16.gmra.mrb[8].mxu1 %v1702_v9  ;;  %v5287_v34 = vadd.f32 %v1527_v24, %v6479_v22  ;;  %v5823_v9 = vld [vmem:[%s7464_s5 + $0xa0] ss:$8 sps:$4 sm:$0xff]   ;;  %v5826_v24 = vld [vmem:[%s7464_s5 + $0xb0] ss:$8 sps:$4 sm:$0xff]  }
 0x235   : > { %v1649_v29 = vmax.f32 %v5286_v20, 0.0  ;;  %3061 = vmatpush1.bf16.msra.mxu1 %v5805_v15  ;;  %v5288_v35 = vadd.f32 %v1529_v27, %v6482_v23 }
 0x236   : > { %v1704_v31 = vpack.c.bf16 %v1648_v26, %v1646_v25  ;;  %3062 = vmatprep.subr.bf16.mxu1 %v5810_v18  ;;  %v1650_v43 = vmax.f32 %v5287_v34, 0.0  ;;  %v5831_v26 = vld [vmem:[%s7464_s5 + $0xc4] ss:$8 sps:$4 sm:$0xff]   ;;  %v5834_v34 = vld [vmem:[%s7464_s5 + $0xd4] ss:$8 sps:$4 sm:$0xff]  }
 0x237   : > { %v1705_v33 = vpack.c.bf16 %v1649_v29, %v1647_v28  ;;  %v1651_v46 = vmax.f32 %v5288_v35, 0.0 }
 0x239   : > { %v1533_v36 = vpop.f32.mrb[60].mxu0  ;;  %2319 = vmatprep.mubr.bf16.mxu1 %v1705_v33  ;;  %3063 = vmatpush1.bf16.msra.mxu1 %v5808_v30 }
 0x23a   : > { %v5289_v38 = vadd.f32 %v1533_v36, %v6479_v22  ;;  %v1535_v39 = vpop.f32.mrb[61].mxu0  ;;  %3064 = vmatprep.subr.bf16.mxu1 %v5813_v32 }
 0x23b   : > { %v5290_v41 = vadd.f32 %v1535_v39, %v6482_v23  ;;  %v1537_v42 = vpop.f32.mrb[62].mxu0 }
 0x23c   : > { %v1652_v44 = vmax.f32 %v5289_v38, 0.0  ;;  %v1539_v45 = vpop.f32.mrb[63].mxu0  ;;  %2320 = vmatmul.mubr.bf16.gmra.mrb[12].mxu1 %v1704_v31  ;;  %v5291_v52 = vadd.f32 %v1537_v42, %v6479_v22  ;;  %v5829_v31 = vld [vmem:[%s7464_s5 + $0xc0] ss:$8 sps:$4 sm:$0xff]   ;;  %v5832_v42 = vld [vmem:[%s7464_s5 + $0xd0] ss:$8 sps:$4 sm:$0xff]  }
 0x23d   : > { %v1653_v47 = vmax.f32 %v5290_v41, 0.0  ;;  %3065 = vmatpush1.bf16.msra.mxu1 %v5811_v37  ;;  %v5292_v53 = vadd.f32 %v1539_v45, %v6482_v23 }
 0x23e   : > { %v1706_v49 = vpack.c.bf16 %v1652_v44, %v1650_v43  ;;  %3066 = vmatprep.subr.bf16.mxu1 %v5816_v40  ;;  %v1654_v61 = vmax.f32 %v5291_v52, 0.0 }
 0x23f   : > { %v1707_v51 = vpack.c.bf16 %v1653_v47, %v1651_v46  ;;  %v1655_v0 = vmax.f32 %v5292_v53, 0.0 }
 0x241   : > { %v1543_v54 = vpop.f32.mrb[64].mxu0  ;;  %2329 = vmatprep.mubr.bf16.mxu1 %v1707_v51  ;;  %3067 = vmatpush1.bf16.msra.mxu1 %v5814_v48 }
 0x242   : > { %v5293_v56 = vadd.f32 %v1543_v54, %v6479_v22  ;;  %v1545_v57 = vpop.f32.mrb[65].mxu0  ;;  %3068 = vmatprep.subr.bf16.mxu1 %v5819_v50 }
 0x243   : > { %v5294_v59 = vadd.f32 %v1545_v57, %v6482_v23  ;;  %v1547_v60 = vpop.f32.mrb[66].mxu0 }
 0x244   : > { %v1656_v62 = vmax.f32 %v5293_v56, 0.0  ;;  %v1549_v63 = vpop.f32.mrb[67].mxu0  ;;  %2330 = vmatmul.mubr.bf16.gmra.mrb[16].mxu1 %v1706_v49  ;;  %v5295_v6 = vadd.f32 %v1547_v60, %v6479_v22 }
 0x245   : > { %v1657_v1 = vmax.f32 %v5294_v59, 0.0  ;;  %3069 = vmatpush1.bf16.msra.mxu1 %v5817_v55  ;;  %v5296_v7 = vadd.f32 %v1549_v63, %v6482_v23 }
 0x246   : > { %v1708_v3 = vpack.c.bf16 %v1656_v62, %v1654_v61  ;;  %3070 = vmatprep.subr.bf16.mxu1 %v5822_v58  ;;  %v1658_v15 = vmax.f32 %v5295_v6, 0.0 }
 0x247   : > { %v1709_v5 = vpack.c.bf16 %v1657_v1, %v1655_v0  ;;  %v1659_v18 = vmax.f32 %v5296_v7, 0.0 }
 0x249   : > { %v1553_v8 = vpop.f32.mrb[68].mxu0  ;;  %2339 = vmatprep.mubr.bf16.mxu1 %v1709_v5  ;;  %3071 = vmatpush1.bf16.msra.mxu1 %v5820_v2 }
 0x24a   : > { %v5297_v10 = vadd.f32 %v1553_v8, %v6479_v22  ;;  %v1555_v11 = vpop.f32.mrb[69].mxu0  ;;  %3072 = vmatprep.subr.bf16.mxu1 %v5825_v4 }
 0x24b   : > { %v5298_v13 = vadd.f32 %v1555_v11, %v6482_v23  ;;  %v1557_v14 = vpop.f32.mrb[70].mxu0 }
 0x24c   : > { %v1660_v16 = vmax.f32 %v5297_v10, 0.0  ;;  %v1559_v17 = vpop.f32.mrb[71].mxu0  ;;  %2340 = vmatmul.mubr.bf16.gmra.mrb[20].mxu1 %v1708_v3  ;;  %v5299_v28 = vadd.f32 %v1557_v14, %v6479_v22 }
 0x24d   : > { %v1661_v20 = vmax.f32 %v5298_v13, 0.0  ;;  %3073 = vmatpush1.bf16.msra.mxu1 %v5823_v9  ;;  %v5300_v29 = vadd.f32 %v1559_v17, %v6482_v23  ;;  %v5843_v17 = vld [vmem:[%s7464_s5 + $0x104] ss:$8 sps:$4 sm:$0xff]  }
 0x24e   : > { %v1710_v25 = vpack.c.bf16 %v1660_v16, %v1658_v15  ;;  %3074 = vmatprep.subr.bf16.mxu1 %v5828_v12  ;;  %v1662_v37 = vmax.f32 %v5299_v28, 0.0  ;;  %v5837_v15 = vld [vmem:[%s7464_s5 + $0xe4] ss:$8 sps:$4 sm:$0xff]   ;;  %v5838_v16 = vld [vmem:[%s7464_s5 + $0xf0] ss:$8 sps:$4 sm:$0xff]  }
 0x24f   : > { %v1711_v27 = vpack.c.bf16 %v1661_v20, %v1659_v18  ;;  %v1663_v40 = vmax.f32 %v5300_v29, 0.0  ;;  %v1784_v18 = vld [vmem:[%s7463_s4] sm:$0x3] }
 0x250   : > { %v6764_v20 = vrot.slane %v1784_v18, %v6471_v19 }
 0x251   : > { %v1563_v30 = vpop.f32.mrb[72].mxu0  ;;  %2349 = vmatprep.mubr.bf16.mxu1 %v1711_v27  ;;  %3075 = vmatpush1.bf16.msra.mxu1 %v5826_v24  ;;  %v6767_v24 = vrot.slane %v1784_v18, %v6476_v21  ;;  %v5856_v18 = vld [vmem:[%s7464_s5 + $0x150] ss:$8 sps:$4 sm:$0xff]  }
 0x252   : > { %v5301_v32 = vadd.f32 %v1563_v30, %v6479_v22  ;;  %v1565_v33 = vpop.f32.mrb[73].mxu0  ;;  %3076 = vmatprep.subr.bf16.mxu1 %v5831_v26 }
 0x253   : > { %v5302_v35 = vadd.f32 %v1565_v33, %v6482_v23  ;;  %v1567_v36 = vpop.f32.mrb[74].mxu0 }
 0x254   : > { %v1664_v38 = vmax.f32 %v5301_v32, 0.0  ;;  %v1569_v39 = vpop.f32.mrb[75].mxu0  ;;  %2350 = vmatmul.mubr.bf16.gmra.mrb[24].mxu1 %v1710_v25  ;;  %v5303_v45 = vadd.f32 %v1567_v36, %v6479_v22 }
 0x255   : > { %v1665_v41 = vmax.f32 %v5302_v35, 0.0  ;;  %3077 = vmatpush1.bf16.msra.mxu1 %v5829_v31  ;;  %v5304_v46 = vadd.f32 %v1569_v39, %v6482_v23 }
 0x256   : > { %v1712_v43 = vpack.c.bf16 %v1664_v38, %v1662_v37  ;;  %3078 = vmatprep.subr.bf16.mxu1 %v5834_v34  ;;  %v1666_v52 = vmax.f32 %v5303_v45, 0.0 }
 0x257   : > { %v1713_v44 = vpack.c.bf16 %v1665_v41, %v1663_v40  ;;  %v1667_v55 = vmax.f32 %v5304_v46, 0.0  ;;  %v5841_v40 = vld [vmem:[%s7464_s5 + $0x100] ss:$8 sps:$4 sm:$0xff]  }
 0x259   : > { %v1573_v47 = vpop.f32.mrb[76].mxu0  ;;  %2359 = vmatprep.mubr.bf16.mxu1 %v1713_v44  ;;  %3079 = vmatpush1.bf16.msra.mxu1 %v5832_v42 }
 0x25a   : > { %v5305_v48 = vadd.f32 %v1573_v47, %v6479_v22  ;;  %v1575_v49 = vpop.f32.mrb[77].mxu0  ;;  %3080 = vmatprep.subr.bf16.mxu1 %v5837_v15  ;;  %v5858_v15 = vld [vmem:[%s7464_s5 + $0x154] ss:$8 sps:$4 sm:$0xff]  }
 0x25b   : > { %v5306_v50 = vadd.f32 %v1575_v49, %v6482_v23  ;;  %v1577_v51 = vpop.f32.mrb[78].mxu0  ;;  %v5844_v49 = vld [vmem:[%s7464_s5 + $0x110] ss:$8 sps:$4 sm:$0xff]  }
 0x25c   : > { %v1668_v53 = vmax.f32 %v5305_v48, 0.0  ;;  %v1579_v54 = vpop.f32.mrb[79].mxu0  ;;  %2360 = vmatmul.mubr.bf16.gmra.mrb[28].mxu1 %v1712_v43  ;;  %v5307_v59 = vadd.f32 %v1577_v51, %v6479_v22  ;;  %v5846_v43 = vld [vmem:[%s7464_s5 + $0x114] ss:$8 sps:$4 sm:$0xff]  }
 0x25d   : > { %v1669_v56 = vmax.f32 %v5306_v50, 0.0  ;;  %v5308_v60 = vadd.f32 %v1579_v54, %v6482_v23 }
 0x25e   : > { %v1714_v57 = vpack.c.bf16 %v1668_v53, %v1666_v52  ;;  %v1670_v2 = vmax.f32 %v5307_v59, 0.0  ;;  %v5849_v52 = vld [vmem:[%s7464_s5 + $0x124] ss:$8 sps:$4 sm:$0xff]  }
 0x25f   : > { %v1715_v58 = vpack.c.bf16 %v1669_v56, %v1667_v55  ;;  %v1671_v5 = vmax.f32 %v5308_v60, 0.0 }
 0x261   : > { %v1583_v61 = vpop.f32.mrb[80].mxu0  ;;  %2369 = vmatprep.mubr.bf16.mxu1 %v1715_v58  ;;  %v5847_v58 = vld [vmem:[%s7464_s5 + $0x120] ss:$8 sps:$4 sm:$0xff]  }
 0x262   : > { %v5309_v62 = vadd.f32 %v1583_v61, %v6479_v22  ;;  %v1585_v63 = vpop.f32.mrb[81].mxu0  ;;  %v5852_v61 = vld [vmem:[%s7464_s5 + $0x134] ss:$8 sps:$4 sm:$0xff]  }
 0x263   : > { %v5310_v0 = vadd.f32 %v1585_v63, %v6482_v23  ;;  %v1587_v1 = vpop.f32.mrb[82].mxu0 }
 0x264   : > { %v1672_v3 = vmax.f32 %v5309_v62, 0.0  ;;  %v1589_v4 = vpop.f32.mrb[83].mxu0  ;;  %2370 = vmatmul.mubr.bf16.gmra.mrb[32].mxu1 %v1714_v57  ;;  %v5311_v11 = vadd.f32 %v1587_v1, %v6479_v22  ;;  %v5840_v22 = vld [vmem:[%s7464_s5 + $0xf4] ss:$8 sps:$4 sm:$0xff]  }
 0x265   : > { %v1673_v6 = vmax.f32 %v5310_v0, 0.0  ;;  %v5312_v7 = vadd.f32 %v1589_v4, %v6482_v23  ;;  %v5835_v23 = vld [vmem:[%s7464_s5 + $0xe0] ss:$8 sps:$4 sm:$0xff]  }
 0x266   : > { %v1716_v8 = vpack.c.bf16 %v1672_v3, %v1670_v2  ;;  %v1674_v13 = vmax.f32 %v5311_v11, 0.0  ;;  %3081 = vmatpush1.bf16.msra.mxu1 %v5835_v23  ;;  %v5850_v3 = vld [vmem:[%s7464_s5 + $0x130] ss:$8 sps:$4 sm:$0xff]  }
 0x267   : > { %v1717_v9 = vpack.c.bf16 %v1673_v6, %v1671_v5  ;;  %v1675_v10 = vmax.f32 %v5312_v7, 0.0  ;;  %3082 = vmatprep.subr.bf16.mxu1 %v5840_v22  ;;  %v5855_v6 = vld [vmem:[%s7464_s5 + $0x144] ss:$8 sps:$4 sm:$0xff]  }
 0x268   : > { %v1718_v14 = vpack.c.bf16 %v1674_v13, %v1674_v13 }
 0x269   : > { %2379 = vmatprep.mubr.bf16.mxu1 %v1717_v9  ;;  %v1719_v12 = vpack.c.bf16 %v1675_v10, %v1675_v10 }
 0x26a   : > { %3083 = vmatpush1.bf16.msra.mxu1 %v5838_v16 }
 0x26b   : > { %3123 = vmatprep.subr.bf16.mxu1 %v5843_v17 }
 0x26c   : > { %2380 = vmatmul.mubr.bf16.gmra.mrb[36].mxu1 %v1716_v8 }
 0x26d   : > { %2389 = vmatprep.mubr.bf16.mxu1 %v1719_v12  ;;  %v5853_v12 = vld [vmem:[%s7464_s5 + $0x140] ss:$8 sps:$4 sm:$0xff]  }
 0x274   : > { %2390 = vmatmul.mubr.bf16.gmra.mrb[40].mxu1 %v1718_v14 }
 0x2f7   : > { %v2291_v25 = vpop.f32.mrb[0].mxu1 }
 0x2f8   : > { %v5313_v26 = vadd.f32 %v2291_v25, %v6764_v20  ;;  %v2293_v27 = vpop.f32.mrb[1].mxu1 }
 0x2f9   : > { %v5314_v28 = vadd.f32 %v2293_v27, %v6767_v24  ;;  %v2295_v29 = vpop.f32.mrb[2].mxu1 }
 0x2fa   : > { %v5315_v30 = vadd.f32 %v2295_v29, %v6764_v20  ;;  %v2297_v31 = vpop.f32.mrb[3].mxu1  ;;  %v2398_v33 = vmax.f32 %v5313_v26, 0.0  ;;  %v5861_v26 = vld [vmem:[%s7464_s5 + $0x164] ss:$8 sps:$4 sm:$0xff]  }
 0x2fb   : > { %v5316_v32 = vadd.f32 %v2297_v31, %v6767_v24  ;;  %v2399_v35 = vmax.f32 %v5314_v28, 0.0  ;;  %v5859_v31 = vld [vmem:[%s7464_s5 + $0x160] ss:$8 sps:$4 sm:$0xff]  }
 0x2fc   : > { %v2400_v34 = vmax.f32 %v5315_v30, 0.0 }
 0x2fd   : > { %v2401_v36 = vmax.f32 %v5316_v32, 0.0 }
 0x2fe   : > { %v2440_v37 = vpack.c.bf16 %v2400_v34, %v2398_v33 }
 0x2ff   : > { %v2441_v38 = vpack.c.bf16 %v2401_v36, %v2399_v35  ;;  %v2301_v39 = vpop.f32.mrb[4].mxu1  ;;  %v5864_v35 = vld [vmem:[%s7464_s5 + $0x174] ss:$8 sps:$4 sm:$0xff]  }
 0x300   : > { %v5317_v41 = vadd.f32 %v2301_v39, %v6764_v20  ;;  %v2303_v42 = vpop.f32.mrb[5].mxu1 }
 0x301   : > { %v5318_v44 = vadd.f32 %v2303_v42, %v6767_v24  ;;  %v2305_v45 = vpop.f32.mrb[6].mxu1  ;;  %3084 = vmatprep.mubr.bf16.mxu1 %v2441_v38  ;;  %v5938_v42 = vld [vmem:[%s7466_s7] sm:$0xff]  }
 0x302   : > { %v5319_v46 = vadd.f32 %v2305_v45, %v6764_v20  ;;  %v2307_v47 = vpop.f32.mrb[7].mxu1  ;;  %3085 = vmatmul.mubr.bf16.vlgmr.msra.gmra.mrb[44].mxu1 %v2440_v37  ;;  %v2402_v50 = vmax.f32 %v5317_v41, 0.0  ;;  %v5937_v41 = vld [vmem:[%s7466_s7 + $0x40] sm:$0xff]  }
 0x303   : > { %v5320_v48 = vadd.f32 %v2307_v47, %v6767_v24  ;;  %3124 = vmatpush1.bf16.msra.mxu1 %v5841_v40  ;;  %v2403_v53 = vmax.f32 %v5318_v44, 0.0  ;;  %5046 = vmatprep.subr.bf16.mxu0 %v5937_v41 }
 0x304   : > { %v2404_v51 = vmax.f32 %v5319_v46, 0.0  ;;  %3125 = vmatprep.subr.bf16.mxu1 %v5846_v43  ;;  %v5939_v43 = vld [vmem:[%s7466_s7 + $0x48] sm:$0xff]   ;;  %v5862_v46 = vld [vmem:[%s7464_s5 + $0x170] ss:$8 sps:$4 sm:$0xff]   ;;  %5047 = vmatpush3.bf16.msra.mxu0 %v5938_v42 }
 0x305   : > { %v2405_v54 = vmax.f32 %v5320_v48, 0.0  ;;  %v5867_v48 = vld [vmem:[%s7464_s5 + $0x184] ss:$8 sps:$4 sm:$0xff]   ;;  %5048 = vmatprep.subr.bf16.mxu0 %v5939_v43  ;;  %v5950_v43 = vld [vmem:[%s7466_s7 + $0x30] sm:$0xff]  }
 0x306   : > { %v2442_v55 = vpack.c.bf16 %v2404_v51, %v2402_v50  ;;  %v5940_v50 = vld [vmem:[%s7466_s7 + $0x8] sm:$0xff]  }
 0x307   : > { %v2443_v56 = vpack.c.bf16 %v2405_v54, %v2403_v53  ;;  %3126 = vmatpush1.bf16.msra.mxu1 %v5844_v49  ;;  %v2311_v57 = vpop.f32.mrb[8].mxu1 }
 0x308   : > { %v5321_v59 = vadd.f32 %v2311_v57, %v6764_v20  ;;  %v2313_v60 = vpop.f32.mrb[9].mxu1  ;;  %3127 = vmatprep.subr.bf16.mxu1 %v5849_v52  ;;  %v5941_v52 = vld [vmem:[%s7466_s7 + $0x50] sm:$0xff]   ;;  %5049 = vmatpush3.bf16.msra.mxu0 %v5940_v50 }
 0x309   : > { %v5322_v62 = vadd.f32 %v2313_v60, %v6767_v24  ;;  %v2315_v63 = vpop.f32.mrb[10].mxu1  ;;  %3094 = vmatprep.mubr.bf16.mxu1 %v2443_v56  ;;  %5050 = vmatprep.subr.bf16.mxu0 %v5941_v52  ;;  %v5885_v52 = vld [vmem:[%s7464_s5 + $0x1e4] ss:$8 sps:$4 sm:$0xff]  }
 0x30a   : > { %v5323_v0 = vadd.f32 %v2315_v63, %v6764_v20  ;;  %v2317_v1 = vpop.f32.mrb[11].mxu1  ;;  %3095 = vmatmul.mubr.bf16.gmra.mrb[48].mxu1 %v2442_v55  ;;  %v2406_v4 = vmax.f32 %v5321_v59, 0.0  ;;  %v5865_v55 = vld [vmem:[%s7464_s5 + $0x180] ss:$8 sps:$4 sm:$0xff]  }
 0x30b   : > { %v5324_v2 = vadd.f32 %v2317_v1, %v6767_v24  ;;  %3128 = vmatpush1.bf16.msra.mxu1 %v5847_v58  ;;  %v2407_v7 = vmax.f32 %v5322_v62, 0.0  ;;  %v5870_v58 = vld [vmem:[%s7464_s5 + $0x194] ss:$8 sps:$4 sm:$0xff]  }
 0x30c   : > { %v2408_v5 = vmax.f32 %v5323_v0, 0.0  ;;  %3129 = vmatprep.subr.bf16.mxu1 %v5852_v61  ;;  %v5942_v61 = vld [vmem:[%s7466_s7 + $0x10] sm:$0xff]   ;;  %v5943_v1 = vld [vmem:[%s7466_s7 + $0x58] sm:$0xff]  }
 0x30d   : > { %v2409_v8 = vmax.f32 %v5324_v2, 0.0  ;;  %5051 = vmatpush3.bf16.msra.mxu0 %v5942_v61 }
 0x30e   : > { %v2444_v9 = vpack.c.bf16 %v2408_v5, %v2406_v4  ;;  %v5868_v4 = vld [vmem:[%s7464_s5 + $0x190] ss:$8 sps:$4 sm:$0xff]   ;;  %5052 = vmatprep.subr.bf16.mxu0 %v5943_v1 }
 0x30f   : > { %v2445_v10 = vpack.c.bf16 %v2409_v8, %v2407_v7  ;;  %3130 = vmatpush1.bf16.msra.mxu1 %v5850_v3  ;;  %v2321_v11 = vpop.f32.mrb[12].mxu1  ;;  %v5944_v8 = vld [vmem:[%s7466_s7 + $0x18] sm:$0xff]  }
 0x310   : > { %v5325_v13 = vadd.f32 %v2321_v11, %v6764_v20  ;;  %v2323_v14 = vpop.f32.mrb[13].mxu1  ;;  %3131 = vmatprep.subr.bf16.mxu1 %v5855_v6  ;;  %v5873_v6 = vld [vmem:[%s7464_s5 + $0x1a4] ss:$8 sps:$4 sm:$0xff]  }
 0x311   : > { %v5326_v23 = vadd.f32 %v2323_v14, %v6767_v24  ;;  %v2325_v22 = vpop.f32.mrb[14].mxu1  ;;  %3104 = vmatprep.mubr.bf16.mxu1 %v2445_v10  ;;  %v5945_v10 = vld [vmem:[%s7466_s7 + $0x60] sm:$0xff]   ;;  %5053 = vmatpush3.bf16.msra.mxu0 %v5944_v8 }
 0x312   : > { %v2327_v16 = vpop.f32.mrb[15].mxu1  ;;  %3105 = vmatmul.mubr.bf16.gmra.mrb[52].mxu1 %v2444_v9  ;;  %v2410_v25 = vmax.f32 %v5325_v13, 0.0  ;;  %v5327_v28 = vadd.f32 %v2325_v22, %v6764_v20  ;;  %v5871_v13 = vld [vmem:[%s7464_s5 + $0x1a0] ss:$8 sps:$4 sm:$0xff]   ;;  %5054 = vmatprep.subr.bf16.mxu0 %v5945_v10 }
 0x313   : > { %v2411_v17 = vmax.f32 %v5326_v23, 0.0  ;;  %3132 = vmatpush1.bf16.msra.mxu1 %v5853_v12  ;;  %v5328_v29 = vadd.f32 %v2327_v16, %v6767_v24  ;;  %v5876_v23 = vld [vmem:[%s7464_s5 + $0x1b4] ss:$8 sps:$4 sm:$0xff]  }
 0x314   : > { %3133 = vmatprep.subr.bf16.mxu1 %v5858_v15  ;;  %v2446_v32 = vpack.c.bf16 %v2410_v25, %v2410_v25  ;;  %v2412_v38 = vmax.f32 %v5327_v28, 0.0 }
 0x315   : > { %v2447_v27 = vpack.c.bf16 %v2411_v17, %v2411_v17  ;;  %v2413_v44 = vmax.f32 %v5328_v29, 0.0  ;;  %v5946_v17 = vld [vmem:[%s7466_s7 + $0x20] sm:$0xff]  }
 0x316   : > { %5055 = vmatpush3.bf16.msra.mxu0 %v5946_v17  ;;  %v5894_v17 = vld [vmem:[%s7464_s5 + $0x214] ss:$8 sps:$4 sm:$0xff]  }
 0x317   : > { %3134 = vmatpush1.bf16.msra.mxu1 %v5856_v18  ;;  %v2331_v30 = vpop.f32.mrb[16].mxu1  ;;  %3114 = vmatprep.mubr.bf16.mxu1 %v2447_v27  ;;  %v5947_v27 = vld [vmem:[%s7466_s7 + $0x68] sm:$0xff]  }
 0x318   : > { %v5329_v33 = vadd.f32 %v2331_v30, %v6764_v20  ;;  %v2333_v34 = vpop.f32.mrb[17].mxu1  ;;  %3135 = vmatprep.subr.bf16.mxu1 %v5861_v26  ;;  %v5874_v30 = vld [vmem:[%s7464_s5 + $0x1b0] ss:$8 sps:$4 sm:$0xff]   ;;  %5056 = vmatprep.subr.bf16.mxu0 %v5947_v27 }
 0x319   : > { %v5330_v36 = vadd.f32 %v2333_v34, %v6767_v24  ;;  %v2335_v37 = vpop.f32.mrb[18].mxu1  ;;  %v5948_v34 = vld [vmem:[%s7466_s7 + $0x28] sm:$0xff]  }
 0x31a   : > { %v2414_v39 = vmax.f32 %v5329_v33, 0.0  ;;  %v2337_v40 = vpop.f32.mrb[19].mxu1  ;;  %3115 = vmatmul.mubr.bf16.gmra.mrb[56].mxu1 %v2446_v32  ;;  %v5331_v51 = vadd.f32 %v2335_v37, %v6764_v20  ;;  %v5879_v32 = vld [vmem:[%s7464_s5 + $0x1c4] ss:$8 sps:$4 sm:$0xff]   ;;  %v5877_v37 = vld [vmem:[%s7464_s5 + $0x1c0] ss:$8 sps:$4 sm:$0xff]   ;;  %5057 = vmatpush3.bf16.msra.mxu0 %v5948_v34 }
 0x31b   : > { %v2415_v45 = vmax.f32 %v5330_v36, 0.0  ;;  %3136 = vmatpush1.bf16.msra.mxu1 %v5859_v31  ;;  %v5332_v53 = vadd.f32 %v2337_v40, %v6767_v24  ;;  %v5882_v40 = vld [vmem:[%s7464_s5 + $0x1d4] ss:$8 sps:$4 sm:$0xff]  }
 0x31c   : > { %v6841_v47 = vpack.c.bf16 %v2414_v39, %v2412_v38  ;;  %3137 = vmatprep.subr.bf16.mxu1 %v5864_v35  ;;  %v2416_v62 = vmax.f32 %v5331_v51, 0.0  ;;  %v5949_v35 = vld [vmem:[%s7466_s7 + $0x70] sm:$0xff]  }
 0x31d   : > { %v2449_v49 = vpack.c.bf16 %v2415_v45, %v2413_v44  ;;  %v2417_v2 = vmax.f32 %v5332_v53, 0.0  ;;  %5058 = vmatprep.subr.bf16.mxu0 %v5949_v35  ;;  %v5897_v35 = vld [vmem:[%s7464_s5 + $0x224] ss:$8 sps:$4 sm:$0xff]  }
 0x31e   : > { %5059 = vmatpush3.bf16.msra.mxu0 %v5950_v43 }
 0x31f   : > { %3138 = vmatpush1.bf16.msra.mxu1 %v5862_v46  ;;  %v2341_v54 = vpop.f32.mrb[20].mxu1  ;;  %3155 = vmatprep.mubr.bf16.mxu1 %v2449_v49  ;;  %v5957_v46 = vld [vmem:[%s7466_s7 + $0x78] sm:$0xff]  }
 0x320   : > { %v5333_v56 = vadd.f32 %v2341_v54, %v6764_v20  ;;  %v2343_v57 = vpop.f32.mrb[21].mxu1  ;;  %3139 = vmatprep.subr.bf16.mxu1 %v5867_v48  ;;  %v5880_v49 = vld [vmem:[%s7464_s5 + $0x1d0] ss:$8 sps:$4 sm:$0xff]   ;;  %5060 = vmatprep.subr.bf16.mxu0 %v5957_v46  ;;  %v5903_v46 = vld [vmem:[%s7464_s5 + $0x244] ss:$8 sps:$4 sm:$0xff]  }
 0x321   : > { %v5334_v59 = vadd.f32 %v2343_v57, %v6767_v24  ;;  %v2345_v60 = vpop.f32.mrb[22].mxu1 }
 0x322   : > { %v2418_v63 = vmax.f32 %v5333_v56, 0.0  ;;  %v2347_v0 = vpop.f32.mrb[23].mxu1  ;;  %v5335_v9 = vadd.f32 %v2345_v60, %v6764_v20 }
 0x323   : > { %v2419_v3 = vmax.f32 %v5334_v59, 0.0  ;;  %3140 = vmatpush1.bf16.msra.mxu1 %v5865_v55  ;;  %v5336_v11 = vadd.f32 %v2347_v0, %v6767_v24  ;;  %v5958_v55 = vld [vmem:[%s7466_s7 + $0x38] sm:$0xff]   ;;  %v5883_v59 = vld [vmem:[%s7464_s5 + $0x1e0] ss:$8 sps:$4 sm:$0xff]  }
 0x324   : > { %v6871_v5 = vpack.c.bf16 %v2418_v63, %v2416_v62  ;;  %3141 = vmatprep.subr.bf16.mxu1 %v5870_v58  ;;  %v2420_v18 = vmax.f32 %v5335_v9, 0.0  ;;  %v5888_v62 = vld [vmem:[%s7464_s5 + $0x1f4] ss:$8 sps:$4 sm:$0xff]   ;;  %5061 = vmatpush3.bf16.msra.mxu0 %v5958_v55  ;;  %v5891_v9 = vld [vmem:[%s7464_s5 + $0x204] ss:$8 sps:$4 sm:$0xff]  }
 0x325   : > { %v6876_v7 = vpack.c.bf16 %v2419_v3, %v2417_v2  ;;  %v2421_v28 = vmax.f32 %v5336_v11, 0.0  ;;  %v5915_v55 = vld [vmem:[%s7464_s5 + $0x284] ss:$8 sps:$4 sm:$0xff]  }
 0x327   : > { %3142 = vmatpush1.bf16.msra.mxu1 %v5868_v4  ;;  %v2351_v12 = vpop.f32.mrb[24].mxu1  ;;  %v5886_v4 = vld [vmem:[%s7464_s5 + $0x1f0] ss:$8 sps:$4 sm:$0xff]  }
 0x328   : > { %v5337_v14 = vadd.f32 %v2351_v12, %v6764_v20  ;;  %v2353_v15 = vpop.f32.mrb[25].mxu1  ;;  %3143 = vmatprep.subr.bf16.mxu1 %v5873_v6 }
 0x329   : > { %v5338_v22 = vadd.f32 %v2353_v15, %v6767_v24  ;;  %v6894_v16 = vpop.f32.mrb[26].mxu1  ;;  %v5889_v15 = vld [vmem:[%s7464_s5 + $0x200] ss:$8 sps:$4 sm:$0xff]  }
 0x32a   : > { %v2422_v25 = vmax.f32 %v5337_v14, 0.0  ;;  %v6899_v26 = vpop.f32.mrb[27].mxu1 }
 0x32b   : > { %v2423_v29 = vmax.f32 %v5338_v22, 0.0  ;;  %3144 = vmatpush1.bf16.msra.mxu1 %v5871_v13 }
 0x32c   : > { %v6907_v31 = vpack.c.bf16 %v2422_v25, %v2420_v18  ;;  %3145 = vmatprep.subr.bf16.mxu1 %v5876_v23 }
 0x32d   : > { %v6912_v33 = vpack.c.bf16 %v2423_v29, %v2421_v28 }
 0x32f   : > { %3146 = vmatpush1.bf16.msra.mxu1 %v5874_v30  ;;  %v2361_v36 = vpop.f32.mrb[28].mxu1  ;;  %v5892_v30 = vld [vmem:[%s7464_s5 + $0x210] ss:$8 sps:$4 sm:$0xff]  }
 0x330   : > { %v5341_v38 = vadd.f32 %v2361_v36, %v6764_v20  ;;  %v2363_v39 = vpop.f32.mrb[29].mxu1  ;;  %3147 = vmatprep.subr.bf16.mxu1 %v5879_v32 }
 0x331   : > { %v5342_v41 = vadd.f32 %v2363_v39, %v6767_v24  ;;  %v2365_v42 = vpop.f32.mrb[30].mxu1  ;;  %v5895_v39 = vld [vmem:[%s7464_s5 + $0x220] ss:$8 sps:$4 sm:$0xff]  }
 0x332   : > { %v5343_v44 = vadd.f32 %v2365_v42, %v6764_v20  ;;  %v2367_v45 = vpop.f32.mrb[31].mxu1  ;;  %v2426_v50 = vmax.f32 %v5341_v38, 0.0  ;;  %v5340_v42 = vadd.f32 %v6899_v26, %v6767_v24  ;;  %v5901_v26 = vld [vmem:[%s7464_s5 + $0x240] ss:$8 sps:$4 sm:$0xff]  }
 0x333   : > { %v5344_v48 = vadd.f32 %v2367_v45, %v6767_v24  ;;  %3148 = vmatpush1.bf16.msra.mxu1 %v5877_v37  ;;  %v2427_v53 = vmax.f32 %v5342_v41, 0.0  ;;  %v5900_v41 = vld [vmem:[%s7464_s5 + $0x234] ss:$8 sps:$4 sm:$0xff]   ;;  %v5898_v45 = vld [vmem:[%s7464_s5 + $0x230] ss:$8 sps:$4 sm:$0xff]  }
 0x334   : > { %v2428_v51 = vmax.f32 %v5343_v44, 0.0  ;;  %3149 = vmatprep.subr.bf16.mxu1 %v5882_v40 }
 0x335   : > { %v2429_v54 = vmax.f32 %v5344_v48, 0.0  ;;  %v2425_v48 = vmax.f32 %v5340_v42, 0.0 }
 0x336   : > { %v6945_v56 = vpack.c.bf16 %v2428_v51, %v2426_v50  ;;  %v5904_v50 = vld [vmem:[%s7464_s5 + $0x250] ss:$8 sps:$4 sm:$0xff]  }
 0x337   : > { %v6947_v57 = vpack.c.bf16 %v2429_v54, %v2427_v53  ;;  %3150 = vmatpush1.bf16.msra.mxu1 %v5880_v49  ;;  %v2371_v58 = vpop.f32.mrb[32].mxu1  ;;  %v2455_v49 = vpack.c.bf16 %v2425_v48, %v2425_v48  ;;  %v5910_v54 = vld [vmem:[%s7464_s5 + $0x270] ss:$8 sps:$4 sm:$0xff]  }
 0x338   : > { %v5345_v60 = vadd.f32 %v2371_v58, %v6764_v20  ;;  %v2373_v61 = vpop.f32.mrb[33].mxu1  ;;  %3151 = vmatprep.subr.bf16.mxu1 %v5885_v52  ;;  %v5907_v52 = vld [vmem:[%s7464_s5 + $0x260] ss:$8 sps:$4 sm:$0xff]  }
 0x339   : > { %v5346_v63 = vadd.f32 %v2373_v61, %v6767_v24  ;;  %v2375_v0 = vpop.f32.mrb[34].mxu1  ;;  %v5913_v58 = vld [vmem:[%s7464_s5 + $0x280] ss:$8 sps:$4 sm:$0xff]  }
 0x33a   : > { %v5347_v1 = vadd.f32 %v2375_v0, %v6764_v20  ;;  %v2377_v2 = vpop.f32.mrb[35].mxu1  ;;  %v2430_v6 = vmax.f32 %v5345_v60, 0.0  ;;  %v5921_v60 = vld [vmem:[%s7464_s5 + $0x2a4] ss:$8 sps:$4 sm:$0xff]   ;;  %v5919_v61 = vld [vmem:[%s7464_s5 + $0x2a0] ss:$8 sps:$4 sm:$0xff]  }
 0x33b   : > { %v5348_v3 = vadd.f32 %v2377_v2, %v6767_v24  ;;  %3152 = vmatpush1.bf16.msra.mxu1 %v5883_v59  ;;  %v2431_v10 = vmax.f32 %v5346_v63, 0.0  ;;  %v5918_v59 = vld [vmem:[%s7464_s5 + $0x294] ss:$8 sps:$4 sm:$0xff]   ;;  %v5922_v63 = vld [vmem:[%s7464_s5 + $0x2b0] ss:$8 sps:$4 sm:$0xff]  }
 0x33c   : > { %v2432_v8 = vmax.f32 %v5347_v1, 0.0  ;;  %3153 = vmatprep.subr.bf16.mxu1 %v5888_v62  ;;  %v5924_v62 = vld [vmem:[%s7464_s5 + $0x2b4] ss:$8 sps:$4 sm:$0xff]   ;;  %v5927_v0 = vld [vmem:[%s7464_s5 + $0x2c4] ss:$8 sps:$4 sm:$0xff]  }
 0x33d   : > { %v2433_v11 = vmax.f32 %v5348_v3, 0.0  ;;  %v5925_v1 = vld [vmem:[%s7464_s5 + $0x2c0] ss:$8 sps:$4 sm:$0xff]   ;;  %v5930_v2 = vld [vmem:[%s7464_s5 + $0x2d4] ss:$8 sps:$4 sm:$0xff]  }
 0x33e   : > { %v6965_v12 = vpack.c.bf16 %v2432_v8, %v2430_v6  ;;  %v5928_v3 = vld [vmem:[%s7464_s5 + $0x2d0] ss:$8 sps:$4 sm:$0xff]   ;;  %v5931_v6 = vld [vmem:[%s7464_s5 + $0x2e0] ss:$8 sps:$4 sm:$0xff]   ;;  %v5936_v8 = vld [vmem:[%s7464_s5 + $0x2f4] ss:$8 sps:$4 sm:$0xff]  }
 0x33f   : > { %v6967_v13 = vpack.c.bf16 %v2433_v11, %v2431_v10  ;;  %3154 = vmatpush1.bf16.msra.mxu1 %v5886_v4  ;;  %v2381_v14 = vpop.f32.mrb[36].mxu1  ;;  %v5933_v4 = vld [vmem:[%s7464_s5 + $0x2e4] ss:$8 sps:$4 sm:$0xff]  }
 0x340   : > { %v5349_v23 = vadd.f32 %v2381_v14, %v6764_v20  ;;  %v2383_v22 = vpop.f32.mrb[37].mxu1  ;;  %3194 = vmatprep.subr.bf16.mxu1 %v5891_v9  ;;  %v5934_v9 = vld [vmem:[%s7464_s5 + $0x2f0] ss:$8 sps:$4 sm:$0xff]   ;;  %v5951_v10 = vld [vmem:[%s7466_s7 + $0xc0] sm:$0xff]   ;;  %v5953_v14 = vld [vmem:[%s7466_s7 + $0xc8] sm:$0xff]  }
 0x341   : > { %v5350_v18 = vadd.f32 %v2383_v22, %v6767_v24  ;;  %v2385_v25 = vpop.f32.mrb[38].mxu1  ;;  %v5952_v11 = vld [vmem:[%s7466_s7 + $0x80] sm:$0xff]   ;;  %v5956_v22 = vld [vmem:[%s7466_s7 + $0x90] sm:$0xff]  }
 0x342   : > { %v5351_v27 = vadd.f32 %v2385_v25, %v6764_v20  ;;  %3156 = vmatmul.mubr.bf16.vlgmr.msra.gmra.mrb[44].mxu1 %v6841_v47  ;;  %v2387_v28 = vpop.f32.mrb[39].mxu1  ;;  %v2434_v32 = vmax.f32 %v5349_v23, 0.0  ;;  %v5955_v23 = vld [vmem:[%s7466_s7 + $0xd0] sm:$0xff]  }
 0x343   : > { %v5352_v29 = vadd.f32 %v2387_v28, %v6767_v24  ;;  %3165 = vmatprep.mubr.bf16.mxu1 %v6876_v7  ;;  %3195 = vmatpush1.bf16.msra.mxu1 %v5889_v15  ;;  %v2435_v36 = vmax.f32 %v5350_v18, 0.0  ;;  %v5954_v15 = vld [vmem:[%s7466_s7 + $0x88] sm:$0xff]   ;;  %v5961_v18 = vld [vmem:[%s7466_s7 + $0xe0] sm:$0xff]  }
 0x344   : > { %v2436_v34 = vmax.f32 %v5351_v27, 0.0  ;;  %3196 = vmatprep.subr.bf16.mxu1 %v5894_v17  ;;  %v5960_v17 = vld [vmem:[%s7466_s7 + $0x98] sm:$0xff]   ;;  %v5963_v27 = vld [vmem:[%s7466_s7 + $0xe8] sm:$0xff]  }
 0x345   : > { %v2437_v37 = vmax.f32 %v5352_v29, 0.0  ;;  %v5964_v29 = vld [vmem:[%s7466_s7 + $0xa8] sm:$0xff]  }
 0x346   : > { %v6987_v47 = vpack.c.bf16 %v2436_v34, %v2434_v32  ;;  %v5966_v34 = vld [vmem:[%s7466_s7 + $0xb0] sm:$0xff]  }
 0x347   : > { %v6989_v38 = vpack.c.bf16 %v2437_v37, %v2435_v36  ;;  %3197 = vmatpush1.bf16.msra.mxu1 %v5892_v30  ;;  %v6991_v7 = vpop.f32.mrb[40].mxu1  ;;  %v5968_v36 = vld [vmem:[%s7466_s7 + $0xb8] sm:$0xff]   ;;  %v5969_v37 = vld [vmem:[%s7466_s7 + $0x140] sm:$0xff]  }
 0x348   : > { %v6996_v40 = vpop.f32.mrb[41].mxu1  ;;  %3198 = vmatprep.subr.bf16.mxu1 %v5897_v35  ;;  %v5967_v35 = vld [vmem:[%s7466_s7 + $0xf8] sm:$0xff]   ;;  %5090 = vmatprep.subr.bf16.mxu0 %v5969_v37  ;;  %v5993_v37 = vld [vmem:[%s7466_s7 + $0x170] sm:$0xff]  }
 0x349   : > { %v2395_v43 = vpop.f32.mrb[42].mxu1 }
 0x34a   : > { %3166 = vmatmul.mubr.bf16.gmra.mrb[48].mxu1 %v6871_v5  ;;  %v2396_v44 = vpop.f32.mrb[43].mxu1  ;;  %v5339_v5 = vadd.f32 %v6894_v16, %v6764_v20  ;;  %v5909_v16 = vld [vmem:[%s7464_s5 + $0x264] ss:$8 sps:$4 sm:$0xff]  }
 0x34b   : > { %3175 = vmatprep.mubr.bf16.mxu1 %v6912_v33  ;;  %3199 = vmatpush1.bf16.msra.mxu1 %v5895_v39  ;;  %v5906_v33 = vld [vmem:[%s7464_s5 + $0x254] ss:$8 sps:$4 sm:$0xff]  }
 0x34c   : > { %3200 = vmatprep.subr.bf16.mxu1 %v5900_v41  ;;  %v2424_v51 = vmax.f32 %v5339_v5, 0.0 }
 0x34e   : > { %v2454_v53 = vpack.c.bf16 %v2424_v51, %v2424_v51  ;;  %v5973_v51 = vld [vmem:[%s7466_s7 + $0x148] sm:$0xff]  }
 0x34f   : > { %3201 = vmatpush1.bf16.msra.mxu1 %v5898_v45 }
 0x350   : > { %3202 = vmatprep.subr.bf16.mxu1 %v5903_v46 }
 0x352   : > { %3176 = vmatmul.mubr.bf16.gmra.mrb[52].mxu1 %v6907_v31  ;;  %v5912_v31 = vld [vmem:[%s7464_s5 + $0x274] ss:$8 sps:$4 sm:$0xff]  }
 0x353   : > { %3185 = vmatprep.mubr.bf16.mxu1 %v2455_v49  ;;  %3203 = vmatpush1.bf16.msra.mxu1 %v5901_v26 }
 0x354   : > { %3204 = vmatprep.subr.bf16.mxu1 %v5906_v33 }
 0x357   : > { %3205 = vmatpush1.bf16.msra.mxu1 %v5904_v50 }
 0x358   : > { %3206 = vmatprep.subr.bf16.mxu1 %v5909_v16 }
 0x35a   : > { %3186 = vmatmul.mubr.bf16.gmra.mrb[56].mxu1 %v2454_v53  ;;  %v5972_v53 = vld [vmem:[%s7466_s7 + $0x180] sm:$0xff]  }
 0x35b   : > { %3207 = vmatpush1.bf16.msra.mxu1 %v5907_v52  ;;  %3226 = vmatprep.mubr.bf16.mxu1 %v6947_v57  ;;  %v5916_v57 = vld [vmem:[%s7464_s5 + $0x290] ss:$8 sps:$4 sm:$0xff]  }
 0x35c   : > { %3208 = vmatprep.subr.bf16.mxu1 %v5912_v31 }
 0x35f   : > { %3209 = vmatpush1.bf16.msra.mxu1 %v5910_v54 }
 0x360   : > { %3210 = vmatprep.subr.bf16.mxu1 %v5915_v55  ;;  %v5975_v55 = vld [vmem:[%s7466_s7 + $0x1c8] sm:$0xff]  }
 0x363   : > { %3211 = vmatpush1.bf16.msra.mxu1 %v5913_v58 }
 0x364   : > { %3212 = vmatprep.subr.bf16.mxu1 %v5918_v59 }
 0x367   : > { %3213 = vmatpush1.bf16.msra.mxu1 %v5916_v57  ;;  %v5974_v57 = vld [vmem:[%s7466_s7 + $0x108] sm:$0xff]  }
 0x368   : > { %3214 = vmatprep.subr.bf16.mxu1 %v5921_v60 }
 0x36b   : > { %3215 = vmatpush1.bf16.msra.mxu1 %v5919_v61  ;;  %v5977_v61 = vld [vmem:[%s7466_s7 + $0x150] sm:$0xff]  }
 0x36c   : > { %3216 = vmatprep.subr.bf16.mxu1 %v5924_v62 }
 0x36f   : > { %3217 = vmatpush1.bf16.msra.mxu1 %v5922_v63 }
 0x370   : > { %3218 = vmatprep.subr.bf16.mxu1 %v5927_v0  ;;  %v5976_v0 = vld [vmem:[%s7466_s7 + $0x188] sm:$0xff]  }
 0x373   : > { %3219 = vmatpush1.bf16.msra.mxu1 %v5925_v1  ;;  %v5979_v1 = vld [vmem:[%s7466_s7 + $0x1d0] sm:$0xff]  }
 0x374   : > { %3220 = vmatprep.subr.bf16.mxu1 %v5930_v2 }
 0x377   : > { %3221 = vmatpush1.bf16.msra.mxu1 %v5928_v3 }
 0x378   : > { %3222 = vmatprep.subr.bf16.mxu1 %v5933_v4  ;;  %v5978_v4 = vld [vmem:[%s7466_s7 + $0x110] sm:$0xff]  }
 0x37b   : > { %3223 = vmatpush1.bf16.msra.mxu1 %v5931_v6  ;;  %v5981_v6 = vld [vmem:[%s7466_s7 + $0x158] sm:$0xff]  }
 0x37c   : > { %3224 = vmatprep.subr.bf16.mxu1 %v5936_v8 }
 0x37f   : > { %3225 = vmatpush1.bf16.msra.mxu1 %v5934_v9 }
 0x380   : > { %5068 = vmatprep.subr.bf16.mxu1 %v5951_v10  ;;  %v5980_v10 = vld [vmem:[%s7466_s7 + $0x190] sm:$0xff]  }
 0x382   : > { %3227 = vmatmul.mubr.bf16.vlgmr.msra.gmra.mrb[44].mxu1 %v6945_v56  ;;  %v5959_v56 = vld [vmem:[%s7466_s7 + $0xd8] sm:$0xff]  }
 0x383   : > { %3236 = vmatprep.mubr.bf16.mxu1 %v6967_v13  ;;  %5069 = vmatpush3.bf16.msra.mxu1 %v5952_v11  ;;  %v5354_v13 = vadd.f32 %v6996_v40, %v6767_v24  ;;  %v5962_v24 = vld [vmem:[%s7466_s7 + $0xa0] sm:$0xff]  }
 0x384   : > { %5070 = vmatprep.subr.bf16.mxu1 %v5953_v14 }
 0x385   : > { %v2439_v25 = vmax.f32 %v5354_v13, 0.0 }
 0x387   : > { %5071 = vmatpush3.bf16.msra.mxu1 %v5954_v15  ;;  %v2463_v28 = vpack.c.bf16 %v2439_v25, %v2439_v25  ;;  %v5983_v15 = vld [vmem:[%s7466_s7 + $0x1d8] sm:$0xff]   ;;  %v5987_v25 = vld [vmem:[%s7466_s7 + $0x1e0] sm:$0xff]  }
 0x388   : > { %5072 = vmatprep.subr.bf16.mxu1 %v5955_v23 }
 0x38a   : > { %3237 = vmatmul.mubr.bf16.gmra.mrb[48].mxu1 %v6965_v12  ;;  %v5353_v12 = vadd.f32 %v6991_v7, %v6764_v20  ;;  %v5965_v20 = vld [vmem:[%s7466_s7 + $0xf0] sm:$0xff]  }
 0x38b   : > { %3246 = vmatprep.mubr.bf16.mxu1 %v6989_v38  ;;  %5073 = vmatpush3.bf16.msra.mxu1 %v5956_v22  ;;  %v2560_v38 = vld [vmem:[%s7465_s6] sm:$0x3]  ;;  %v5982_v22 = vld [vmem:[%s7466_s7 + $0x118] sm:$0xff]  }
 0x38c   : > { %5074 = vmatprep.subr.bf16.mxu1 %v5959_v56  ;;  %v2438_v30 = vmax.f32 %v5353_v12, 0.0  ;;  %v7151_v7 = vrot.slane %v2560_v38, %v6471_v19  ;;  %v7154_v39 = vrot.slane %v2560_v38, %v6476_v21  ;;  %v5970_v21 = vld [vmem:[%s7466_s7 + $0x100] sm:$0xff]   ;;  %v5989_v12 = vld [vmem:[%s7466_s7 + $0x168] sm:$0xff]   ;;  %v5995_v38 = vld [vmem:[%s7466_s7 + $0x1f0] sm:$0xff]  }
 0x38e   : > { %v2462_v32 = vpack.c.bf16 %v2438_v30, %v2438_v30 }
 0x38f   : > { %5075 = vmatpush3.bf16.msra.mxu1 %v5960_v17  ;;  %v5985_v17 = vld [vmem:[%s7466_s7 + $0x160] sm:$0xff]  }
 0x390   : > { %5076 = vmatprep.subr.bf16.mxu1 %v5961_v18  ;;  %v5984_v18 = vld [vmem:[%s7466_s7 + $0x198] sm:$0xff]  }
 0x392   : > { %3247 = vmatmul.mubr.bf16.gmra.mrb[52].mxu1 %v6987_v47  ;;  %v5971_v47 = vld [vmem:[%s7466_s7 + $0x1c0] sm:$0xff]  }
 0x393   : > { %3256 = vmatprep.mubr.bf16.mxu1 %v2463_v28  ;;  %5077 = vmatpush3.bf16.msra.mxu1 %v5962_v24  ;;  %v5986_v24 = vld [vmem:[%s7466_s7 + $0x120] sm:$0xff]  }
 0x394   : > { %5078 = vmatprep.subr.bf16.mxu1 %v5963_v27  ;;  %v5988_v28 = vld [vmem:[%s7466_s7 + $0x1a0] sm:$0xff]  }
 0x397   : > { %5079 = vmatpush3.bf16.msra.mxu1 %v5964_v29 }
 0x398   : > { %5080 = vmatprep.subr.bf16.mxu1 %v5965_v20 }
 0x39a   : > { %3257 = vmatmul.mubr.bf16.gmra.mrb[56].mxu1 %v2462_v32  ;;  %v5991_v32 = vld [vmem:[%s7466_s7 + $0x1e8] sm:$0xff]  }
 0x39b   : > { %5081 = vmatpush3.bf16.msra.mxu1 %v5966_v34 }
 0x39c   : > { %5082 = vmatprep.subr.bf16.mxu1 %v5967_v35  ;;  %v5990_v35 = vld [vmem:[%s7466_s7 + $0x128] sm:$0xff]  }
 0x39f   : > { %5083 = vmatpush3.bf16.msra.mxu1 %v5968_v36 }
 0x3a0   : > { %5112 = vmatprep.subr.bf16.mxu1 %v5971_v47  ;;  %v5992_v47 = vld [vmem:[%s7466_s7 + $0x1a8] sm:$0xff]  }
 0x455   : > { %v3228_v40 = vpop.f32.mrb[44].mxu1 }
 0x456   : > { %v5355_v41 = vadd.f32 %v3228_v40, %v7151_v7  ;;  %v3230_v42 = vpop.f32.mrb[45].mxu1  ;;  %v5994_v40 = vld [vmem:[%s7466_s7 + $0x130] sm:$0xff]  }
 0x457   : > { %v5356_v43 = vadd.f32 %v3230_v42, %v7154_v39  ;;  %v3232_v44 = vpop.f32.mrb[46].mxu1  ;;  %v5997_v42 = vld [vmem:[%s7466_s7 + $0x178] sm:$0xff]  }
 0x458   : > { %v3265_v45 = vmax.f32 %v5355_v41, 0.0  ;;  %v5357_v46 = vadd.f32 %v3232_v44, %v7151_v7  ;;  %v3234_v48 = vpop.f32.mrb[47].mxu1  ;;  %v5996_v44 = vld [vmem:[%s7466_s7 + $0x1b0] sm:$0xff]  }
 0x459   : > { %v3266_v26 = vmax.f32 %v5356_v43, 0.0  ;;  %v5358_v5 = vadd.f32 %v3234_v48, %v7154_v39 }
 0x45a   : > { %v3267_v33 = vmax.f32 %v5357_v46, 0.0  ;;  %v3279_v50 = vpack.c.bf16 %v3265_v45, %v3265_v45  ;;  %v5999_v46 = vld [vmem:[%s7466_s7 + $0x1f8] sm:$0xff]  }
 0x45b   : > { %v3280_v19 = vpack.c.bf16 %v3266_v26, %v3266_v26  ;;  %v3268_v49 = vmax.f32 %v5358_v5, 0.0  ;;  %v5998_v26 = vld [vmem:[%s7466_s7 + $0x138] sm:$0xff]  }
 0x45c   : > { %v3281_v31 = vpack.c.bf16 %v3267_v33, %v3267_v33  ;;  %v6001_v33 = vld [vmem:[%s7466_s7 + $0x240] sm:$0xff]  }
 0x45d   : > { %v3282_v16 = vpack.c.bf16 %v3268_v49, %v3268_v49  ;;  %v7166_v52 = vpop.f32.mrb[48].mxu1  ;;  %4228 = vmatprep.mubr.bf16.mxu0 %v3280_v19 }
 0x45e   : > { %v3240_v54 = vpop.f32.mrb[49].mxu1  ;;  %4229 = vmatmul.mubr.bf16.vlgmr.msra.gmra.mrb[84].mxu0 %v3279_v50  ;;  %v5359_v41 = vadd.f32 %v7166_v52, %v7151_v7  ;;  %v6002_v50 = vld [vmem:[%s7466_s7 + $0x200] sm:$0xff]  }
 0x45f   : > { %v5360_v58 = vadd.f32 %v3240_v54, %v7154_v39  ;;  %5091 = vmatpush3.bf16.msra.mxu0 %v5970_v21  ;;  %v7175_v59 = vpop.f32.mrb[50].mxu1  ;;  %4268 = vmatprep.mubr.bf16.mxu1 %v3282_v16  ;;  %v6005_v16 = vld [vmem:[%s7466_s7 + $0x248] sm:$0xff]  }
 0x460   : > { %v3244_v60 = vpop.f32.mrb[51].mxu1  ;;  %4269 = vmatmul.mubr.bf16.vlgmr.msra.gmra.mrb[60].mxu1 %v3281_v31  ;;  %5092 = vmatprep.subr.bf16.mxu0 %v5973_v51  ;;  %v5361_v45 = vadd.f32 %v7175_v59, %v7151_v7  ;;  %v3269_v5 = vmax.f32 %v5359_v41, 0.0  ;;  %v6007_v54 = vld [vmem:[%s7466_s7 + $0x2c8] sm:$0xff]   ;;  %v6009_v59 = vld [vmem:[%s7466_s7 + $0x250] sm:$0xff]   ;;  %v6041_v41 = vld [vmem:[%s7466_s7 + $0x360] sm:$0xff]  }
 0x461   : > { %v3270_v62 = vmax.f32 %v5360_v58, 0.0  ;;  %v5362_v63 = vadd.f32 %v3244_v60, %v7154_v39  ;;  %5113 = vmatpush3.bf16.msra.mxu1 %v5972_v53  ;;  %v6004_v53 = vld [vmem:[%s7466_s7 + $0x280] sm:$0xff]   ;;  %v6006_v58 = vld [vmem:[%s7466_s7 + $0x208] sm:$0xff]   ;;  %v6011_v60 = vld [vmem:[%s7466_s7 + $0x2d0] sm:$0xff]  }
 0x462   : > { %5114 = vmatprep.subr.bf16.mxu1 %v5975_v55  ;;  %v3271_v49 = vmax.f32 %v5361_v45, 0.0  ;;  %v3283_v51 = vpack.c.bf16 %v3269_v5, %v3269_v5  ;;  %v6045_v45 = vld [vmem:[%s7466_s7 + $0x370] sm:$0xff]  }
 0x463   : > { %v3284_v2 = vpack.c.bf16 %v3270_v62, %v3270_v62  ;;  %v3272_v3 = vmax.f32 %v5362_v63, 0.0  ;;  %5093 = vmatpush3.bf16.msra.mxu0 %v5974_v57  ;;  %v6008_v57 = vld [vmem:[%s7466_s7 + $0x288] sm:$0xff]   ;;  %v6013_v62 = vld [vmem:[%s7466_s7 + $0x258] sm:$0xff]   ;;  %v6012_v63 = vld [vmem:[%s7466_s7 + $0x290] sm:$0xff]  }
 0x464   : > { %5094 = vmatprep.subr.bf16.mxu0 %v5977_v61  ;;  %v3285_v31 = vpack.c.bf16 %v3271_v49, %v3271_v49  ;;  %v6010_v61 = vld [vmem:[%s7466_s7 + $0x210] sm:$0xff]   ;;  %v6050_v49 = vld [vmem:[%s7468_s9 + $0x8] sm:$0xff]  }
 0x465   : > { %v3286_v8 = vpack.c.bf16 %v3272_v3, %v3272_v3  ;;  %5115 = vmatpush3.bf16.msra.mxu1 %v5976_v0  ;;  %v3248_v9 = vpop.f32.mrb[52].mxu1  ;;  %4308 = vmatprep.mubr.bf16.mxu0 %v3284_v2  ;;  %v6015_v0 = vld [vmem:[%s7466_s7 + $0x2d8] sm:$0xff]   ;;  %v6017_v2 = vld [vmem:[%s7466_s7 + $0x260] sm:$0xff]  }
 0x466   : > { %v7200_v11 = vadd.f32 %v3248_v9, %v7151_v7  ;;  %v3250_v14 = vpop.f32.mrb[53].mxu1  ;;  %5116 = vmatprep.subr.bf16.mxu1 %v5979_v1  ;;  %v6014_v1 = vld [vmem:[%s7466_s7 + $0x218] sm:$0xff]   ;;  %v6020_v9 = vld [vmem:[%s7466_s7 + $0x2a0] sm:$0xff]  }
 0x467   : > { %5095 = vmatpush3.bf16.msra.mxu0 %v5978_v4  ;;  %v3252_v23 = vpop.f32.mrb[54].mxu1  ;;  %4348 = vmatprep.mubr.bf16.mxu1 %v3286_v8  ;;  %v5364_v43 = vadd.f32 %v3250_v14, %v7154_v39  ;;  %v6016_v3 = vld [vmem:[%s7466_s7 + $0x298] sm:$0xff]   ;;  %v6019_v4 = vld [vmem:[%s7466_s7 + $0x2e0] sm:$0xff]   ;;  %v6021_v8 = vld [vmem:[%s7466_s7 + $0x268] sm:$0xff]  }
 0x468   : > { %v7209_v56 = vadd.f32 %v3252_v23, %v7151_v7  ;;  %v3254_v13 = vpop.f32.mrb[55].mxu1  ;;  %5096 = vmatprep.subr.bf16.mxu0 %v5981_v6  ;;  %v6018_v6 = vld [vmem:[%s7466_s7 + $0x220] sm:$0xff]   ;;  %v6022_v14 = vld [vmem:[%s7466_s7 + $0x228] sm:$0xff]  }
 0x469   : > { %5117 = vmatpush3.bf16.msra.mxu1 %v5980_v10  ;;  %v5366_v48 = vadd.f32 %v3254_v13, %v7154_v39  ;;  %v3274_v19 = vmax.f32 %v5364_v43, 0.0  ;;  %v6023_v10 = vld [vmem:[%s7466_s7 + $0x2e8] sm:$0xff]   ;;  %v6026_v13 = vld [vmem:[%s7466_s7 + $0x230] sm:$0xff]  }
 0x46a   : > { %5118 = vmatprep.subr.bf16.mxu1 %v5983_v15  ;;  %v6025_v15 = vld [vmem:[%s7466_s7 + $0x270] sm:$0xff]   ;;  %v6024_v23 = vld [vmem:[%s7466_s7 + $0x2a8] sm:$0xff]  }
 0x46b   : > { %5097 = vmatpush3.bf16.msra.mxu0 %v5982_v22  ;;  %v3276_v21 = vmax.f32 %v5366_v48, 0.0  ;;  %v3288_v52 = vpack.c.bf16 %v3274_v19, %v3274_v19  ;;  %v6027_v22 = vld [vmem:[%s7466_s7 + $0x2f0] sm:$0xff]   ;;  %v6043_v43 = vld [vmem:[%s7466_s7 + $0x368] sm:$0xff]   ;;  %v6047_v48 = vld [vmem:[%s7466_s7 + $0x378] sm:$0xff]  }
 0x46c   : > { %5098 = vmatprep.subr.bf16.mxu0 %v5985_v17  ;;  %v6029_v17 = vld [vmem:[%s7466_s7 + $0x278] sm:$0xff]   ;;  %v6049_v19 = vld [vmem:[%s7468_s9] sm:$0xff]  }
 0x46d   : > { %5119 = vmatpush3.bf16.msra.mxu1 %v5984_v18  ;;  %v3258_v27 = vpop.f32.mrb[56].mxu1  ;;  %v3290_v55 = vpack.c.bf16 %v3276_v21, %v3276_v21  ;;  %v6028_v18 = vld [vmem:[%s7466_s7 + $0x2b0] sm:$0xff]   ;;  %v6053_v21 = vld [vmem:[%s7468_s9 + $0x20] sm:$0xff]  }
 0x46e   : > { %v7230_v29 = vadd.f32 %v3258_v27, %v7151_v7  ;;  %v3260_v30 = vpop.f32.mrb[57].mxu1  ;;  %5120 = vmatprep.subr.bf16.mxu1 %v5987_v25  ;;  %v6000_v7 = vld [vmem:[%s7466_s7 + $0x1b8] sm:$0xff]   ;;  %v6033_v27 = vld [vmem:[%s7466_s7 + $0x340] sm:$0xff]  }
 0x46f   : > { %v7236_v20 = vadd.f32 %v3260_v30, %v7154_v39  ;;  %5099 = vmatpush3.bf16.msra.mxu0 %v5986_v24  ;;  %v3262_v34 = vpop.f32.mrb[58].mxu1  ;;  %v6003_v39 = vld [vmem:[%s7466_s7 + $0x2c0] sm:$0xff]   ;;  %v6031_v25 = vld [vmem:[%s7466_s7 + $0x2f8] sm:$0xff]  }
 0x470   : > { %v3263_v36 = vpop.f32.mrb[59].mxu1  ;;  %5100 = vmatprep.subr.bf16.mxu0 %v5989_v12  ;;  %v6030_v24 = vld [vmem:[%s7466_s7 + $0x238] sm:$0xff]   ;;  %v3273_v12 = vmax.f32 %v7200_v11, 0.0  ;;  %v6034_v11 = vld [vmem:[%s7466_s7 + $0x300] sm:$0xff]   ;;  %v3277_v5 = vmax.f32 %v7230_v29, 0.0  ;;  %v6051_v29 = vld [vmem:[%s7468_s9 + $0x10] sm:$0xff]  }
 0x471   : > { %5121 = vmatpush3.bf16.msra.mxu1 %v5988_v28  ;;  %v3278_v28 = vmax.f32 %v7236_v20, 0.0  ;;  %v6032_v30 = vld [vmem:[%s7466_s7 + $0x2b8] sm:$0xff]  }
 0x472   : > { %5122 = vmatprep.subr.bf16.mxu1 %v5991_v32  ;;  %v3275_v32 = vmax.f32 %v7209_v56, 0.0  ;;  %v3287_v34 = vpack.c.bf16 %v3273_v12, %v3273_v12  ;;  %v6036_v56 = vld [vmem:[%s7466_s7 + $0x308] sm:$0xff]  }
 0x473   : > { %5101 = vmatpush3.bf16.msra.mxu0 %v5990_v35  ;;  %v6035_v35 = vld [vmem:[%s7466_s7 + $0x348] sm:$0xff]   ;;  %v3292_v20 = vpack.c.bf16 %v3278_v28, %v3278_v28 }
 0x474   : > { %5102 = vmatprep.subr.bf16.mxu0 %v5993_v37  ;;  %v3289_v36 = vpack.c.bf16 %v3275_v32, %v3275_v32  ;;  %v6037_v37 = vld [vmem:[%s7466_s7 + $0x350] sm:$0xff]  }
 0x475   : > { %5123 = vmatpush3.bf16.msra.mxu1 %v5992_v47  ;;  %v6038_v47 = vld [vmem:[%s7466_s7 + $0x310] sm:$0xff]  }
 0x476   : > { %5124 = vmatprep.subr.bf16.mxu1 %v5995_v38  ;;  %v6039_v38 = vld [vmem:[%s7466_s7 + $0x358] sm:$0xff]  }
 0x477   : > { %5103 = vmatpush3.bf16.msra.mxu0 %v5994_v40  ;;  %v6040_v40 = vld [vmem:[%s7466_s7 + $0x318] sm:$0xff]  }
 0x478   : > { %5104 = vmatprep.subr.bf16.mxu0 %v5997_v42  ;;  %v6042_v42 = vld [vmem:[%s7466_s7 + $0x320] sm:$0xff]  }
 0x479   : > { %5125 = vmatpush3.bf16.msra.mxu1 %v5996_v44  ;;  %v6044_v44 = vld [vmem:[%s7466_s7 + $0x328] sm:$0xff]  }
 0x47a   : > { %5126 = vmatprep.subr.bf16.mxu1 %v5999_v46  ;;  %v6046_v46 = vld [vmem:[%s7466_s7 + $0x330] sm:$0xff]  }
 0x47b   : > { %5105 = vmatpush3.bf16.msra.mxu0 %v5998_v26  ;;  %v6048_v26 = vld [vmem:[%s7466_s7 + $0x338] sm:$0xff]  }
 0x47c   : > { %5134 = vmatprep.subr.bf16.mxu0 %v6001_v33  ;;  %v3291_v33 = vpack.c.bf16 %v3277_v5, %v3277_v5 }
 0x47d   : > { %5127 = vmatpush3.bf16.msra.mxu1 %v6000_v7  ;;  %v6066_v7 = vmov 0.0  }
 0x47e   : > { %4309 = vmatmul.mubr.bf16.vlgmr.msra.gmra.mrb[88].mxu0 %v3283_v51  ;;  %5156 = vmatprep.subr.bf16.mxu1 %v6003_v39  ;;  %v6052_v39 = vld [vmem:[%s7468_s9 + $0x18] sm:$0xff]   ;;  %v6055_v51 = vld [vmem:[%s7468_s9 + $0x30] sm:$0xff]  }
 0x47f   : > { %5135 = vmatpush3.bf16.msra.mxu0 %v6002_v50  ;;  %4388 = vmatprep.mubr.bf16.mxu0 %v3288_v52  ;;  %v6054_v50 = vld [vmem:[%s7468_s9 + $0x28] sm:$0xff]  }
 0x480   : > { %4349 = vmatmul.mubr.bf16.vlgmr.msra.gmra.mrb[64].mxu1 %v3285_v31  ;;  %5136 = vmatprep.subr.bf16.mxu0 %v6005_v16  ;;  %v6056_v16 = vld [vmem:[%s7468_s9 + $0x38] sm:$0xff]  }
 0x481   : > { %5157 = vmatpush3.bf16.msra.mxu1 %v6004_v53  ;;  %4428 = vmatprep.mubr.bf16.mxu1 %v3290_v55  ;;  %v4922_v53 = vld [vmem:[%s7467_s8] ss:$0 sm:$0xff] }
 0x482   : > { %5158 = vmatprep.subr.bf16.mxu1 %v6007_v54 }
 0x483   : > { %5137 = vmatpush3.bf16.msra.mxu0 %v6006_v58 }
 0x484   : > { %5138 = vmatprep.subr.bf16.mxu0 %v6009_v59 }
 0x485   : > { %5159 = vmatpush3.bf16.msra.mxu1 %v6008_v57 }
 0x486   : > { %5160 = vmatprep.subr.bf16.mxu1 %v6011_v60 }
 0x487   : > { %5139 = vmatpush3.bf16.msra.mxu0 %v6010_v61 }
 0x488   : > { %5140 = vmatprep.subr.bf16.mxu0 %v6013_v62 }
 0x489   : > { %5161 = vmatpush3.bf16.msra.mxu1 %v6012_v63 }
 0x48a   : > { %5162 = vmatprep.subr.bf16.mxu1 %v6015_v0 }
 0x48b   : > { %5141 = vmatpush3.bf16.msra.mxu0 %v6014_v1 }
 0x48c   : > { %5142 = vmatprep.subr.bf16.mxu0 %v6017_v2 }
 0x48d   : > { %5163 = vmatpush3.bf16.msra.mxu1 %v6016_v3 }
 0x48e   : > { %5164 = vmatprep.subr.bf16.mxu1 %v6019_v4 }
 0x48f   : > { %5143 = vmatpush3.bf16.msra.mxu0 %v6018_v6 }
 0x490   : > { %5144 = vmatprep.subr.bf16.mxu0 %v6021_v8 }
 0x491   : > { %5165 = vmatpush3.bf16.msra.mxu1 %v6020_v9 }
 0x492   : > { %5166 = vmatprep.subr.bf16.mxu1 %v6023_v10 }
 0x493   : > { %5145 = vmatpush3.bf16.msra.mxu0 %v6022_v14 }
 0x494   : > { %5146 = vmatprep.subr.bf16.mxu0 %v6025_v15 }
 0x495   : > { %5167 = vmatpush3.bf16.msra.mxu1 %v6024_v23 }
 0x496   : > { %5168 = vmatprep.subr.bf16.mxu1 %v6027_v22 }
 0x497   : > { %5147 = vmatpush3.bf16.msra.mxu0 %v6026_v13 }
 0x498   : > { %5148 = vmatprep.subr.bf16.mxu0 %v6029_v17 }
 0x499   : > { %5169 = vmatpush3.bf16.msra.mxu1 %v6028_v18 }
 0x49a   : > { %5170 = vmatprep.subr.bf16.mxu1 %v6031_v25 }
 0x49b   : > { %5149 = vmatpush3.bf16.msra.mxu0 %v6030_v24 }
 0x49c   : > { %5178 = vmatprep.subr.bf16.mxu0 %v6033_v27 }
 0x49d   : > { %5171 = vmatpush3.bf16.msra.mxu1 %v6032_v30 }
 0x49e   : > { %4389 = vmatmul.mubr.bf16.vlgmr.msra.gmra.mrb[92].mxu0 %v3287_v34  ;;  %5209 = vmatprep.subr.bf16.mxu1 %v6066_v7 }
 0x49f   : > { %5179 = vmatpush3.bf16.msra.mxu0 %v6034_v11  ;;  %4468 = vmatprep.mubr.bf16.mxu0 %v3292_v20 }
 0x4a0   : > { %4429 = vmatmul.mubr.bf16.vlgmr.msra.gmra.mrb[68].mxu1 %v3289_v36  ;;  %5180 = vmatprep.subr.bf16.mxu0 %v6035_v35 }
 0x4a1   : > { %5210 = vmatpush3.bf16.msra.mxu1 %v6049_v19  ;;  %5225 = vmatprep.mubr.msk.bf16.mxu1 %vm6067_vm0, %v6066_v7 }
 0x4a2   : > { %5211 = vmatprep.subr.bf16.mxu1 %v6066_v7 }
 0x4a3   : > { %5181 = vmatpush3.bf16.msra.mxu0 %v6036_v56 }
 0x4a4   : > { %5182 = vmatprep.subr.bf16.mxu0 %v6037_v37 }
 0x4a5   : > { %5212 = vmatpush3.bf16.msra.mxu1 %v6050_v49 }
 0x4a6   : > { %5213 = vmatprep.subr.bf16.mxu1 %v6066_v7 }
 0x4a7   : > { %5183 = vmatpush3.bf16.msra.mxu0 %v6038_v47 }
 0x4a8   : > { %5184 = vmatprep.subr.bf16.mxu0 %v6039_v38 }
 0x4a9   : > { %5214 = vmatpush3.bf16.msra.mxu1 %v6051_v29 }
 0x4aa   : > { %5215 = vmatprep.subr.bf16.mxu1 %v6066_v7 }
 0x4ab   : > { %5185 = vmatpush3.bf16.msra.mxu0 %v6040_v40 }
 0x4ac   : > { %5186 = vmatprep.subr.bf16.mxu0 %v6041_v41  ;;  %v5035_v41 = vld [vmem:[%s7469_s10] ss:$0 sm:$0xff] }
 0x4ad   : > { %5216 = vmatpush3.bf16.msra.mxu1 %v6052_v39 }
 0x4ae   : > { %5217 = vmatprep.subr.bf16.mxu1 %v6066_v7 }
 0x4af   : > { %5187 = vmatpush3.bf16.msra.mxu0 %v6042_v42 }
 0x4b0   : > { %5188 = vmatprep.subr.bf16.mxu0 %v6043_v43 }
 0x4b1   : > { %5218 = vmatpush3.bf16.msra.mxu1 %v6053_v21 }
 0x4b2   : > { %5219 = vmatprep.subr.bf16.mxu1 %v6066_v7 }
 0x4b3   : > { %5189 = vmatpush3.bf16.msra.mxu0 %v6044_v44 }
 0x4b4   : > { %5190 = vmatprep.subr.bf16.mxu0 %v6045_v45 }
 0x4b5   : > { %5220 = vmatpush3.bf16.msra.mxu1 %v6054_v50 }
 0x4b6   : > { %5221 = vmatprep.subr.bf16.mxu1 %v6066_v7 }
 0x4b7   : > { %5191 = vmatpush3.bf16.msra.mxu0 %v6046_v46 }
 0x4b8   : > { %5192 = vmatprep.subr.bf16.mxu0 %v6047_v48 }
 0x4b9   : > { %5222 = vmatpush3.bf16.msra.mxu1 %v6055_v51 }
 0x4ba   : > { %5223 = vmatprep.subr.bf16.mxu1 %v6066_v7 }
 0x4bb   : > { %5193 = vmatpush3.bf16.msra.mxu0 %v6048_v26 }
 0x4bd   : > { %5224 = vmatpush3.bf16.msra.mxu1 %v6056_v16 }
 0x4be   : > { %4469 = vmatmul.mubr.bf16.vlgmr.msra.gmra.mrb[96].mxu0 %v3291_v33 }
 0x531   : > { %v5062_v52 = vpop.f32.mrb[84].mxu0 }
 0x532   : > { %v5063_v31 = vpop.f32.mrb[85].mxu0 }
 0x533   : > { %v5064_v54 = vadd.f32 %v5063_v31, %v5062_v52  ;;  %v5065_v55 = vpop.f32.mrb[86].mxu0  ;;  %v5084_v58 = vpop.f32.mrb[60].mxu1 }
 0x534   : > { %v5066_v59 = vpop.f32.mrb[87].mxu0  ;;  %v5085_v57 = vpop.f32.mrb[61].mxu1 }
 0x535   : > { %v4231_v60 = vadd.f32 %v5064_v54, %v4922_v53  ;;  %v5086_v61 = vadd.f32 %v5085_v57, %v5084_v58  ;;  %v5087_v62 = vpop.f32.mrb[62].mxu1 }
 0x536   : > { %v5088_v63 = vpop.f32.mrb[63].mxu1 }
 0x537   : > { %v4271_v0 = vadd.f32 %v5086_v61, %v4231_v60 }
 0x551   : > { %v5106_v1 = vpop.f32.mrb[88].mxu0 }
 0x552   : > { %v5107_v2 = vpop.f32.mrb[89].mxu0 }
 0x553   : > { %v5108_v3 = vadd.f32 %v5107_v2, %v5106_v1  ;;  %v5109_v4 = vpop.f32.mrb[90].mxu0  ;;  %v5128_v6 = vpop.f32.mrb[64].mxu1 }
 0x554   : > { %v5110_v8 = vpop.f32.mrb[91].mxu0  ;;  %v5129_v9 = vpop.f32.mrb[65].mxu1 }
 0x555   : > { %v4311_v10 = vadd.f32 %v5108_v3, %v4271_v0  ;;  %v5130_v14 = vadd.f32 %v5129_v9, %v5128_v6  ;;  %v5131_v15 = vpop.f32.mrb[66].mxu1 }
 0x556   : > { %v5132_v23 = vpop.f32.mrb[67].mxu1 }
 0x557   : > { %v4351_v22 = vadd.f32 %v5130_v14, %v4311_v10 }
 0x571   : > { %v5150_v13 = vpop.f32.mrb[92].mxu0 }
 0x572   : > { %v5151_v17 = vpop.f32.mrb[93].mxu0 }
 0x573   : > { %v5152_v18 = vadd.f32 %v5151_v17, %v5150_v13  ;;  %v5153_v25 = vpop.f32.mrb[94].mxu0  ;;  %v5172_v24 = vpop.f32.mrb[68].mxu1 }
 0x574   : > { %v5154_v12 = vpop.f32.mrb[95].mxu0  ;;  %v5173_v27 = vpop.f32.mrb[69].mxu1 }
 0x575   : > { %v4391_v28 = vadd.f32 %v5152_v18, %v4351_v22  ;;  %v5174_v30 = vadd.f32 %v5173_v27, %v5172_v24  ;;  %v5175_v32 = vpop.f32.mrb[70].mxu1 }
 0x576   : > { %v5176_v11 = vpop.f32.mrb[71].mxu1 }
 0x577   : > { %v4431_v34 = vadd.f32 %v5174_v30, %v4391_v28 }
 0x591   : > { %v5194_v35 = vpop.f32.mrb[96].mxu0 }
 0x592   : > { %v5195_v20 = vpop.f32.mrb[97].mxu0 }
 0x593   : > { %v5196_v36 = vadd.f32 %v5195_v20, %v5194_v35  ;;  %v5197_v56 = vpop.f32.mrb[98].mxu0 }
 0x594   : > { %v5198_v37 = vpop.f32.mrb[99].mxu0 }
 0x595   : > { %v4471_v47 = vadd.f32 %v5196_v36, %v4431_v34 }
 0x597   : > { %v4476_v38 = vmax.f32 %v4471_v47, 0.0 }
 0x599   : > { %v4477_v40 = vpack.c.bf16 %v4476_v38, %v4476_v38 }
 0x59b   : > { %5226 = vmatmul.mubr.bf16.vlgmr.msra.gmra.mrb[72].mxu1 %v4477_v40 }
 0x66e   : > { %v4583_v42 = vpop.f32.mrb[72].mxu1 }
 0x66f   : > { %v4584_v43 = vadd.f32 %v5035_v41, %v4583_v42  ;;  %v5227_v44 = vpop.f32.mrb[73].mxu1 }
 0x670   : > { %v4586_v45 = vpop.f32.mrb[74].mxu1 }
 0x671   : > { %4590 = vst.msk [vmem:[%s384_s20] sm:$0xff] %vm4589_vm1, %v4584_v43  ;;  %v5228_v46 = vpop.f32.mrb[75].mxu1 }
 0x672 PF: > { %s21_s17 = sadd.s32 1, %s6063_s17  }
 0x673   : > { %p18_p4 = scmp.ge.s32.totalorder %s21_s17, 4  }
 0x675   :  { %20 = sbr.rel (!%p18_p4) target bundleno = 1 (0x1), region = 94 }

</bundles_post_ra>
